<compile_context>
chip_gen: v6e
topology: v6e:2x2x1
jax: 0.10.0
libtpu: 0.0.40
codegen_flags: <defaults>
</compile_context>

<pallas_src>
import math

import jax
import jax.numpy as jnp
from jax import lax
from jax.experimental import pallas as pl
from jax.experimental.pallas import tpu as pltpu

# --- Config (scaled-down StyleGAN2-ADA mapping defaults: 512/512/8 -> 32/32/8) ---
Z_DIM = 32
W_DIM = 32
NUM_LAYERS = 8
NUM_WS = 14
LR_MULTIPLIER = 0.01          # MappingNetwork default
TRUNCATION_PSI = 0.5          # wrapper default
TRUNCATION_CUTOFF = 8         # wrapper default
SINGLE_W = False
LRELU_SLOPE = 0.2             # bias_act 'lrelu' alpha
LRELU_GAIN = math.sqrt(2.0)   # bias_act 'lrelu' def_gain
CUTOFF = min(TRUNCATION_CUTOFF, NUM_WS)


def _round_up(x, m):
    return ((x + m - 1) // m) * m


def prepare_mapping_params(weights_t, biases, w_avg, *, weight_dtype=jnp.float32):
    """One-time host-side fold of all static gains into the parameters.

    weights_t : (L, in, out)  pre-transposed layer weights (x @ w_t == x @ W.T)
    biases    : (L, out) or (L, 1, out)
    w_avg     : (1, W)
    Returns (weights_folded, biases_folded, w_avg_scaled):
      weights_folded[l] = weights_t[l] * weight_gain_l * (sqrt(2) if l > 0 else 1), cast to
                          weight_dtype (bf16 for the MXU fast path at production dims)
      biases_folded[l]  = biases[l] * lr_multiplier           shape (L, W), f32
      w_avg_scaled      = w_avg * (1 - psi)                    shape (1, W), f32
    """
    gains = []
    for l in range(NUM_LAYERS):
        in_features = Z_DIM if l == 0 else W_DIM
        g = LR_MULTIPLIER / math.sqrt(in_features)
        if l > 0:
            g *= LRELU_GAIN            # previous layer's lrelu gain folded into this matmul
        gains.append(g)
    gains = jnp.asarray(gains, jnp.float32)[:, None, None]          # (L, 1, 1)
    weights_folded = (weights_t.astype(jnp.float32) * gains).astype(weight_dtype)
    biases_folded = (biases.astype(jnp.float32) * LR_MULTIPLIER).reshape(NUM_LAYERS, W_DIM)
    w_avg_scaled = w_avg.astype(jnp.float32) * (1.0 - TRUNCATION_PSI)
    return weights_folded, biases_folded, w_avg_scaled


def mapping_kernel(z_ref, wf_ref, bf_ref, wavgs_ref, ws_ref):
    """normalize -> 8x (matmul + bias + lrelu, gains pre-folded) -> two slice stores of ws."""
    tb = z_ref.shape[0]
    mxu_dtype = wf_ref.dtype          # f32 (reference/check) or bf16 (production fast path)
    out_dtype = ws_ref.dtype

    x = z_ref[...].astype(jnp.float32)
    # normalize_2nd_moment over the feature (lane) axis
    x = x * lax.rsqrt(jnp.mean(x * x, axis=1, keepdims=True) + 1e-8)

    for l in range(NUM_LAYERS):       # static unroll (num_layers small & fixed)
        y = jnp.dot(x.astype(mxu_dtype), wf_ref[l], preferred_element_type=jnp.float32)
        y = y + bf_ref[l][None, :]
        x = jnp.where(y >= 0, y, LRELU_SLOPE * y)   # sqrt(2) gain folded into next layer's W

    # Epilogue: last layer's lrelu gain + truncation lerp, fully folded.
    w = x * LRELU_GAIN                                              # untruncated w
    w_trunc = wavgs_ref[...] + (TRUNCATION_PSI * LRELU_GAIN) * x    # w_avg.lerp(w, psi)

    # Two static-slice broadcast stores (no iota / select / extra broadcast materialized).
    if CUTOFF > 0:
        ws_ref[:, :CUTOFF, :] = jnp.broadcast_to(
            w_trunc.astype(out_dtype)[:, None, :], (tb, CUTOFF, W_DIM))
    if CUTOFF < NUM_WS:
        ws_ref[:, CUTOFF:, :] = jnp.broadcast_to(
            w.astype(out_dtype)[:, None, :], (tb, NUM_WS - CUTOFF, W_DIM))


def _build_mapping_call(Bp, TB, out_dtype, single_buffer_params):
    """Builds the pallas_call for a padded batch Bp with batch tile TB."""
    param_kwargs = {}
    if single_buffer_params and hasattr(pl, "Buffered"):
        # Constant index_map -> double-buffering these blocks is pure VMEM waste.
        param_kwargs = dict(pipeline_mode=pl.Buffered(1))

    in_specs = [
        pl.BlockSpec((TB, Z_DIM), lambda i: (i, 0)),
        # Parameters: same block every grid step -> stay VMEM-resident across batch tiles.
        pl.BlockSpec((NUM_LAYERS, Z_DIM, W_DIM), lambda i: (0, 0, 0), **param_kwargs),
        pl.BlockSpec((NUM_LAYERS, W_DIM), lambda i: (0, 0), **param_kwargs),
        pl.BlockSpec((1, W_DIM), lambda i: (0, 0), **param_kwargs),
    ]
    return pl.pallas_call(
        mapping_kernel,
        out_shape=jax.ShapeDtypeStruct((Bp, NUM_WS, W_DIM), out_dtype),
        grid_spec=pltpu.PrefetchScalarGridSpec(
            num_scalar_prefetch=0,
            grid=(Bp // TB,),
            in_specs=in_specs,
            out_specs=pl.BlockSpec((TB, NUM_WS, W_DIM), lambda i: (i, 0, 0)),
        ),
        compiler_params=pltpu.CompilerParams(
            dimension_semantics=("parallel",),       # shard batch tiles across v7x's 2 TCs
            vmem_limit_bytes=48 * 1024 * 1024,        # > v5e's small default, < v7x's 64 MiB
        ),
    )


def stylegan2ada_mapping_forward(z, weights_folded, biases_folded, w_avg_scaled,
                                 *, batch_tile=128, out_dtype=jnp.float32):
    """Runs the Pallas kernel over a batch grid; emits the full (B, num_ws, W) ws tensor."""
    B = z.shape[0]
    # >= 2 grid steps whenever B allows (so "parallel" can shard across v7x's two TCs),
    # capped at batch_tile to bound VMEM, floored at the 8-row sublane granule.
    TB = max(8, min(batch_tile, _round_up(pl.cdiv(B, 2), 8)))
    Bp = _round_up(B, TB)
    if Bp != B:
        z = jnp.pad(z, ((0, Bp - B), (0, 0)))

    ws = None
    last_err = None
    for single_buffer_params in (True, False):
        try:
            call = _build_mapping_call(Bp, TB, out_dtype, single_buffer_params)
            ws = call(z, weights_folded, biases_folded, w_avg_scaled)
            ws = jax.block_until_ready(ws)
            break
        except Exception as e:   # pipeline_mode=Buffered(1) unsupported -> default buffering
            last_err = e
            ws = None
    if ws is None:
        raise last_err

    if Bp != B:
        ws = ws[:B]
    if SINGLE_W:
        ws = ws[:, 0:1]
    return ws


def reference_forward(z, weights_t, biases, w_avg):
    """Pure-JAX reference mirroring the PyTorch forward (unfolded math), for correctness."""
    x = z.astype(jnp.float32)
    x = x * jax.lax.rsqrt(jnp.mean(x * x, axis=1, keepdims=True) + 1e-8)
    for l in range(NUM_LAYERS):
        in_features = Z_DIM if l == 0 else W_DIM
        weight_gain = LR_MULTIPLIER / math.sqrt(in_features)
        y = x @ (weights_t[l] * weight_gain) + biases[l] * LR_MULTIPLIER
        x = jnp.where(y >= 0, y, LRELU_SLOPE * y) * LRELU_GAIN
    ws = jnp.tile(x[:, None, :], (1, NUM_WS, 1))
    trunc = w_avg + (ws[:, :CUTOFF] - w_avg) * TRUNCATION_PSI
    ws = jnp.concatenate([trunc, ws[:, CUTOFF:]], axis=1)
    if SINGLE_W:
        ws = ws[:, 0:1]
    return ws


if __name__ == "__main__":
    key = jax.random.PRNGKey(0)
    k_z, k_w, k_avg = jax.random.split(key, 3)

    B = 8
    z = jax.random.normal(k_z, (B, Z_DIM), dtype=jnp.float32)

    # Parameters, deterministic init mirroring FullyConnectedLayer.__init__:
    #   weight = randn(out, in) / lr_multiplier ; bias = zeros(out)
    # (z_dim == w_dim, so all 8 layer weights stack into one (L, in, out) tensor,
    #  pre-transposed so the kernel does x @ w_t directly == x @ W.T in PyTorch.)
    w_keys = jax.random.split(k_w, NUM_LAYERS)
    weights_t = jnp.stack(
        [
            (jax.random.normal(w_keys[l], (W_DIM, Z_DIM if l == 0 else W_DIM), dtype=jnp.float32)
             / LR_MULTIPLIER).T
            for l in range(NUM_LAYERS)
        ],
        axis=0,
    )  # (L, in, out)
    biases = jnp.zeros((NUM_LAYERS, W_DIM), dtype=jnp.float32)  # bias_init = 0

    # w_avg is a buffer (zeros at __init__, EMA-updated during training);
    # use a deterministic random value so the truncation lerp path is non-trivial.
    w_avg = jax.random.normal(k_avg, (1, W_DIM), dtype=jnp.float32)

    ws_ref = reference_forward(z, weights_t, biases, w_avg)

    # --- f32 path (tight correctness check against the f32 reference) ---
    wf, bf, wavg_s = prepare_mapping_params(weights_t, biases, w_avg)
    ws = jax.block_until_ready(stylegan2ada_mapping_forward(z, wf, bf, wavg_s))
    assert ws.shape == (B, NUM_WS, W_DIM), ws.shape
    assert jnp.allclose(ws, ws_ref, atol=1e-4, rtol=1e-4), float(jnp.max(jnp.abs(ws - ws_ref)))

    # --- bf16 MXU path (production perf path on v5e/v6e/v7x); loose sanity bound only ---
    wf16, bf2, wavg2 = prepare_mapping_params(weights_t, biases, w_avg, weight_dtype=jnp.bfloat16)
    ws16 = jax.block_until_ready(stylegan2ada_mapping_forward(z, wf16, bf2, wavg2))
    err16 = float(jnp.max(jnp.abs(ws16.astype(jnp.float32) - ws_ref)))
    assert ws16.shape == (B, NUM_WS, W_DIM), ws16.shape
    assert err16 < 0.2, err16   # O(1) outputs; bf16 weights over 8 layers stay well inside this

    # TODO(synk): conditional-label embedding path (c_dim > 0) and update_emas (w_avg EMA) are
    # not exercised by this wrapper's forward (c=None) and are not implemented.
    print("KERNEL_OK")
</pallas_src>

<mosaic_0001>
module attributes {stable_mosaic.version = 11 : i64} {
  func.func @mapping_kernel(%arg0: i32, %arg1: memref<8x32xf32, #tpu.memory_space<vmem>>, %arg2: memref<8x32x32xf32, #tpu.memory_space<vmem>>, %arg3: memref<8x32xf32, #tpu.memory_space<vmem>>, %arg4: memref<1x32xf32, #tpu.memory_space<vmem>>, %arg5: memref<8x14x32xf32, #tpu.memory_space<vmem>>) attributes {dimension_semantics = [#tpu.dimension_semantics<parallel>], iteration_bounds = array<i64: 1>, scalar_prefetch = 0 : i64, scratch_operands = 0 : i64, tpu.core_type = #tpu.core_type<tc>, window_params = [{transform_indices = @transform_0, window_bounds = array<i64: 8, 32>}, {pipeline_mode = #tpu.pipeline_mode<synchronous>, transform_indices = @transform_1, window_bounds = array<i64: 8, 32, 32>}, {pipeline_mode = #tpu.pipeline_mode<synchronous>, transform_indices = @transform_2, window_bounds = array<i64: 8, 32>}, {pipeline_mode = #tpu.pipeline_mode<synchronous>, transform_indices = @transform_3, window_bounds = array<i64: 1, 32>}, {transform_indices = @transform_4, window_bounds = array<i64: 8, 14, 32>}]} {
    %c0 = arith.constant 0 : index
    %c0_0 = arith.constant 0 : index
    %0 = vector.load %arg1[%c0, %c0_0] : memref<8x32xf32, #tpu.memory_space<vmem>>, vector<8x32xf32>
    %1 = arith.mulf %0, %0 : vector<8x32xf32>
    %cst = arith.constant dense<0.000000e+00> : vector<8xf32>
    %2 = vector.multi_reduction <add>, %1, %cst [1] : vector<8x32xf32> to vector<8xf32>
    %3 = vector.shape_cast %2 : vector<8xf32> to vector<8x1xf32>
    %cst_1 = arith.constant 3.200000e+01 : f32
    %4 = vector.broadcast %cst_1 : f32 to vector<8x1xf32>
    %5 = arith.divf %3, %4 : vector<8x1xf32>
    %cst_2 = arith.constant 9.99999993E-9 : f32
    %6 = vector.broadcast %cst_2 : f32 to vector<8x1xf32>
    %7 = arith.addf %5, %6 : vector<8x1xf32>
    %8 = math.rsqrt %7 : vector<8x1xf32>
    %9 = vector.broadcast %8 : vector<8x1xf32> to vector<8x32xf32>
    %10 = arith.mulf %0, %9 : vector<8x32xf32>
    %c0_3 = arith.constant 0 : index
    %c0_4 = arith.constant 0 : index
    %c0_5 = arith.constant 0 : index
    %11 = vector.load %arg2[%c0_3, %c0_4, %c0_5] : memref<8x32x32xf32, #tpu.memory_space<vmem>>, vector<1x32x32xf32>
    %12 = vector.shape_cast %11 : vector<1x32x32xf32> to vector<32x32xf32>
    %cst_6 = arith.constant dense<0.000000e+00> : vector<8x32xf32>
    %13 = tpu.matmul %10, %12, %cst_6 {dimension_numbers = #tpu.dot_dimension_numbers<[1], [0], [0], [1], [0, 0, 1, 1], [], []>} : vector<8x32xf32>, vector<32x32xf32>, vector<8x32xf32> -> vector<8x32xf32>
    %c0_7 = arith.constant 0 : index
    %c0_8 = arith.constant 0 : index
    %14 = vector.load %arg3[%c0_7, %c0_8] : memref<8x32xf32, #tpu.memory_space<vmem>>, vector<1x32xf32>
    %15 = vector.shape_cast %14 : vector<1x32xf32> to vector<32xf32>
    %16 = vector.shape_cast %15 : vector<32xf32> to vector<1x32xf32>
    %17 = vector.broadcast %16 : vector<1x32xf32> to vector<8x32xf32>
    %18 = arith.addf %13, %17 : vector<8x32xf32>
    %cst_9 = arith.constant 0.000000e+00 : f32
    %19 = vector.broadcast %cst_9 : f32 to vector<8x32xf32>
    %20 = arith.cmpf oge, %18, %19 : vector<8x32xf32>
    %cst_10 = arith.constant 2.000000e-01 : f32
    %21 = vector.broadcast %cst_10 : f32 to vector<8x32xf32>
    %22 = arith.mulf %21, %18 : vector<8x32xf32>
    %23 = arith.select %20, %18, %22 : vector<8x32xi1>, vector<8x32xf32>
    %c1 = arith.constant 1 : index
    %c0_11 = arith.constant 0 : index
    %c0_12 = arith.constant 0 : index
    %24 = vector.load %arg2[%c1, %c0_11, %c0_12] : memref<8x32x32xf32, #tpu.memory_space<vmem>>, vector<1x32x32xf32>
    %25 = vector.shape_cast %24 : vector<1x32x32xf32> to vector<32x32xf32>
    %cst_13 = arith.constant dense<0.000000e+00> : vector<8x32xf32>
    %26 = tpu.matmul %23, %25, %cst_13 {dimension_numbers = #tpu.dot_dimension_numbers<[1], [0], [0], [1], [0, 0, 1, 1], [], []>} : vector<8x32xf32>, vector<32x32xf32>, vector<8x32xf32> -> vector<8x32xf32>
    %c1_14 = arith.constant 1 : index
    %c0_15 = arith.constant 0 : index
    %27 = vector.load %arg3[%c1_14, %c0_15] : memref<8x32xf32, #tpu.memory_space<vmem>>, vector<1x32xf32>
    %28 = vector.shape_cast %27 : vector<1x32xf32> to vector<32xf32>
    %29 = vector.shape_cast %28 : vector<32xf32> to vector<1x32xf32>
    %30 = vector.broadcast %29 : vector<1x32xf32> to vector<8x32xf32>
    %31 = arith.addf %26, %30 : vector<8x32xf32>
    %cst_16 = arith.constant 0.000000e+00 : f32
    %32 = vector.broadcast %cst_16 : f32 to vector<8x32xf32>
    %33 = arith.cmpf oge, %31, %32 : vector<8x32xf32>
    %cst_17 = arith.constant 2.000000e-01 : f32
    %34 = vector.broadcast %cst_17 : f32 to vector<8x32xf32>
    %35 = arith.mulf %34, %31 : vector<8x32xf32>
    %36 = arith.select %33, %31, %35 : vector<8x32xi1>, vector<8x32xf32>
    %c2 = arith.constant 2 : index
    %c0_18 = arith.constant 0 : index
    %c0_19 = arith.constant 0 : index
    %37 = vector.load %arg2[%c2, %c0_18, %c0_19] : memref<8x32x32xf32, #tpu.memory_space<vmem>>, vector<1x32x32xf32>
    %38 = vector.shape_cast %37 : vector<1x32x32xf32> to vector<32x32xf32>
    %cst_20 = arith.constant dense<0.000000e+00> : vector<8x32xf32>
    %39 = tpu.matmul %36, %38, %cst_20 {dimension_numbers = #tpu.dot_dimension_numbers<[1], [0], [0], [1], [0, 0, 1, 1], [], []>} : vector<8x32xf32>, vector<32x32xf32>, vector<8x32xf32> -> vector<8x32xf32>
    %c2_21 = arith.constant 2 : index
    %c0_22 = arith.constant 0 : index
    %40 = vector.load %arg3[%c2_21, %c0_22] : memref<8x32xf32, #tpu.memory_space<vmem>>, vector<1x32xf32>
    %41 = vector.shape_cast %40 : vector<1x32xf32> to vector<32xf32>
    %42 = vector.shape_cast %41 : vector<32xf32> to vector<1x32xf32>
    %43 = vector.broadcast %42 : vector<1x32xf32> to vector<8x32xf32>
    %44 = arith.addf %39, %43 : vector<8x32xf32>
    %cst_23 = arith.constant 0.000000e+00 : f32
    %45 = vector.broadcast %cst_23 : f32 to vector<8x32xf32>
    %46 = arith.cmpf oge, %44, %45 : vector<8x32xf32>
    %cst_24 = arith.constant 2.000000e-01 : f32
    %47 = vector.broadcast %cst_24 : f32 to vector<8x32xf32>
    %48 = arith.mulf %47, %44 : vector<8x32xf32>
    %49 = arith.select %46, %44, %48 : vector<8x32xi1>, vector<8x32xf32>
    %c3 = arith.constant 3 : index
    %c0_25 = arith.constant 0 : index
    %c0_26 = arith.constant 0 : index
    %50 = vector.load %arg2[%c3, %c0_25, %c0_26] : memref<8x32x32xf32, #tpu.memory_space<vmem>>, vector<1x32x32xf32>
    %51 = vector.shape_cast %50 : vector<1x32x32xf32> to vector<32x32xf32>
    %cst_27 = arith.constant dense<0.000000e+00> : vector<8x32xf32>
    %52 = tpu.matmul %49, %51, %cst_27 {dimension_numbers = #tpu.dot_dimension_numbers<[1], [0], [0], [1], [0, 0, 1, 1], [], []>} : vector<8x32xf32>, vector<32x32xf32>, vector<8x32xf32> -> vector<8x32xf32>
    %c3_28 = arith.constant 3 : index
    %c0_29 = arith.constant 0 : index
    %53 = vector.load %arg3[%c3_28, %c0_29] : memref<8x32xf32, #tpu.memory_space<vmem>>, vector<1x32xf32>
    %54 = vector.shape_cast %53 : vector<1x32xf32> to vector<32xf32>
    %55 = vector.shape_cast %54 : vector<32xf32> to vector<1x32xf32>
    %56 = vector.broadcast %55 : vector<1x32xf32> to vector<8x32xf32>
    %57 = arith.addf %52, %56 : vector<8x32xf32>
    %cst_30 = arith.constant 0.000000e+00 : f32
    %58 = vector.broadcast %cst_30 : f32 to vector<8x32xf32>
    %59 = arith.cmpf oge, %57, %58 : vector<8x32xf32>
    %cst_31 = arith.constant 2.000000e-01 : f32
    %60 = vector.broadcast %cst_31 : f32 to vector<8x32xf32>
    %61 = arith.mulf %60, %57 : vector<8x32xf32>
    %62 = arith.select %59, %57, %61 : vector<8x32xi1>, vector<8x32xf32>
    %c4 = arith.constant 4 : index
    %c0_32 = arith.constant 0 : index
    %c0_33 = arith.constant 0 : index
    %63 = vector.load %arg2[%c4, %c0_32, %c0_33] : memref<8x32x32xf32, #tpu.memory_space<vmem>>, vector<1x32x32xf32>
    %64 = vector.shape_cast %63 : vector<1x32x32xf32> to vector<32x32xf32>
    %cst_34 = arith.constant dense<0.000000e+00> : vector<8x32xf32>
    %65 = tpu.matmul %62, %64, %cst_34 {dimension_numbers = #tpu.dot_dimension_numbers<[1], [0], [0], [1], [0, 0, 1, 1], [], []>} : vector<8x32xf32>, vector<32x32xf32>, vector<8x32xf32> -> vector<8x32xf32>
    %c4_35 = arith.constant 4 : index
    %c0_36 = arith.constant 0 : index
    %66 = vector.load %arg3[%c4_35, %c0_36] : memref<8x32xf32, #tpu.memory_space<vmem>>, vector<1x32xf32>
    %67 = vector.shape_cast %66 : vector<1x32xf32> to vector<32xf32>
    %68 = vector.shape_cast %67 : vector<32xf32> to vector<1x32xf32>
    %69 = vector.broadcast %68 : vector<1x32xf32> to vector<8x32xf32>
    %70 = arith.addf %65, %69 : vector<8x32xf32>
    %cst_37 = arith.constant 0.000000e+00 : f32
    %71 = vector.broadcast %cst_37 : f32 to vector<8x32xf32>
    %72 = arith.cmpf oge, %70, %71 : vector<8x32xf32>
    %cst_38 = arith.constant 2.000000e-01 : f32
    %73 = vector.broadcast %cst_38 : f32 to vector<8x32xf32>
    %74 = arith.mulf %73, %70 : vector<8x32xf32>
    %75 = arith.select %72, %70, %74 : vector<8x32xi1>, vector<8x32xf32>
    %c5 = arith.constant 5 : index
    %c0_39 = arith.constant 0 : index
    %c0_40 = arith.constant 0 : index
    %76 = vector.load %arg2[%c5, %c0_39, %c0_40] : memref<8x32x32xf32, #tpu.memory_space<vmem>>, vector<1x32x32xf32>
    %77 = vector.shape_cast %76 : vector<1x32x32xf32> to vector<32x32xf32>
    %cst_41 = arith.constant dense<0.000000e+00> : vector<8x32xf32>
    %78 = tpu.matmul %75, %77, %cst_41 {dimension_numbers = #tpu.dot_dimension_numbers<[1], [0], [0], [1], [0, 0, 1, 1], [], []>} : vector<8x32xf32>, vector<32x32xf32>, vector<8x32xf32> -> vector<8x32xf32>
    %c5_42 = arith.constant 5 : index
    %c0_43 = arith.constant 0 : index
    %79 = vector.load %arg3[%c5_42, %c0_43] : memref<8x32xf32, #tpu.memory_space<vmem>>, vector<1x32xf32>
    %80 = vector.shape_cast %79 : vector<1x32xf32> to vector<32xf32>
    %81 = vector.shape_cast %80 : vector<32xf32> to vector<1x32xf32>
    %82 = vector.broadcast %81 : vector<1x32xf32> to vector<8x32xf32>
    %83 = arith.addf %78, %82 : vector<8x32xf32>
    %cst_44 = arith.constant 0.000000e+00 : f32
    %84 = vector.broadcast %cst_44 : f32 to vector<8x32xf32>
    %85 = arith.cmpf oge, %83, %84 : vector<8x32xf32>
    %cst_45 = arith.constant 2.000000e-01 : f32
    %86 = vector.broadcast %cst_45 : f32 to vector<8x32xf32>
    %87 = arith.mulf %86, %83 : vector<8x32xf32>
    %88 = arith.select %85, %83, %87 : vector<8x32xi1>, vector<8x32xf32>
    %c6 = arith.constant 6 : index
    %c0_46 = arith.constant 0 : index
    %c0_47 = arith.constant 0 : index
    %89 = vector.load %arg2[%c6, %c0_46, %c0_47] : memref<8x32x32xf32, #tpu.memory_space<vmem>>, vector<1x32x32xf32>
    %90 = vector.shape_cast %89 : vector<1x32x32xf32> to vector<32x32xf32>
    %cst_48 = arith.constant dense<0.000000e+00> : vector<8x32xf32>
    %91 = tpu.matmul %88, %90, %cst_48 {dimension_numbers = #tpu.dot_dimension_numbers<[1], [0], [0], [1], [0, 0, 1, 1], [], []>} : vector<8x32xf32>, vector<32x32xf32>, vector<8x32xf32> -> vector<8x32xf32>
    %c6_49 = arith.constant 6 : index
    %c0_50 = arith.constant 0 : index
    %92 = vector.load %arg3[%c6_49, %c0_50] : memref<8x32xf32, #tpu.memory_space<vmem>>, vector<1x32xf32>
    %93 = vector.shape_cast %92 : vector<1x32xf32> to vector<32xf32>
    %94 = vector.shape_cast %93 : vector<32xf32> to vector<1x32xf32>
    %95 = vector.broadcast %94 : vector<1x32xf32> to vector<8x32xf32>
    %96 = arith.addf %91, %95 : vector<8x32xf32>
    %cst_51 = arith.constant 0.000000e+00 : f32
    %97 = vector.broadcast %cst_51 : f32 to vector<8x32xf32>
    %98 = arith.cmpf oge, %96, %97 : vector<8x32xf32>
    %cst_52 = arith.constant 2.000000e-01 : f32
    %99 = vector.broadcast %cst_52 : f32 to vector<8x32xf32>
    %100 = arith.mulf %99, %96 : vector<8x32xf32>
    %101 = arith.select %98, %96, %100 : vector<8x32xi1>, vector<8x32xf32>
    %c7 = arith.constant 7 : index
    %c0_53 = arith.constant 0 : index
    %c0_54 = arith.constant 0 : index
    %102 = vector.load %arg2[%c7, %c0_53, %c0_54] : memref<8x32x32xf32, #tpu.memory_space<vmem>>, vector<1x32x32xf32>
    %103 = vector.shape_cast %102 : vector<1x32x32xf32> to vector<32x32xf32>
    %cst_55 = arith.constant dense<0.000000e+00> : vector<8x32xf32>
    %104 = tpu.matmul %101, %103, %cst_55 {dimension_numbers = #tpu.dot_dimension_numbers<[1], [0], [0], [1], [0, 0, 1, 1], [], []>} : vector<8x32xf32>, vector<32x32xf32>, vector<8x32xf32> -> vector<8x32xf32>
    %c7_56 = arith.constant 7 : index
    %c0_57 = arith.constant 0 : index
    %105 = vector.load %arg3[%c7_56, %c0_57] : memref<8x32xf32, #tpu.memory_space<vmem>>, vector<1x32xf32>
    %106 = vector.shape_cast %105 : vector<1x32xf32> to vector<32xf32>
    %107 = vector.shape_cast %106 : vector<32xf32> to vector<1x32xf32>
    %108 = vector.broadcast %107 : vector<1x32xf32> to vector<8x32xf32>
    %109 = arith.addf %104, %108 : vector<8x32xf32>
    %cst_58 = arith.constant 0.000000e+00 : f32
    %110 = vector.broadcast %cst_58 : f32 to vector<8x32xf32>
    %111 = arith.cmpf oge, %109, %110 : vector<8x32xf32>
    %cst_59 = arith.constant 2.000000e-01 : f32
    %112 = vector.broadcast %cst_59 : f32 to vector<8x32xf32>
    %113 = arith.mulf %112, %109 : vector<8x32xf32>
    %114 = arith.select %111, %109, %113 : vector<8x32xi1>, vector<8x32xf32>
    %cst_60 = arith.constant 1.41421354 : f32
    %115 = vector.broadcast %cst_60 : f32 to vector<8x32xf32>
    %116 = arith.mulf %114, %115 : vector<8x32xf32>
    %c0_61 = arith.constant 0 : index
    %c0_62 = arith.constant 0 : index
    %117 = vector.load %arg4[%c0_61, %c0_62] : memref<1x32xf32, #tpu.memory_space<vmem>>, vector<1x32xf32>
    %cst_63 = arith.constant 0.707106769 : f32
    %118 = vector.broadcast %cst_63 : f32 to vector<8x32xf32>
    %119 = arith.mulf %118, %114 : vector<8x32xf32>
    %120 = vector.broadcast %117 : vector<1x32xf32> to vector<8x32xf32>
    %121 = arith.addf %120, %119 : vector<8x32xf32>
    %122 = vector.shape_cast %121 : vector<8x32xf32> to vector<8x1x32xf32>
    %123 = vector.shape_cast %122 : vector<8x1x32xf32> to vector<8x1x32xf32>
    %124 = vector.broadcast %123 : vector<8x1x32xf32> to vector<8x8x32xf32>
    %c0_64 = arith.constant 0 : index
    %c0_65 = arith.constant 0 : index
    %c0_66 = arith.constant 0 : index
    %125 = vector.load %arg5[%c0_64, %c0_65, %c0_66] : memref<8x14x32xf32, #tpu.memory_space<vmem>>, vector<8x8x32xf32>
    tpu.vector_store %arg5[%c0_64, %c0_65, %c0_66], %124 {strides = array<i32>} : memref<8x14x32xf32, #tpu.memory_space<vmem>>, vector<8x8x32xf32>,
    %126 = vector.shape_cast %116 : vector<8x32xf32> to vector<8x1x32xf32>
    %127 = vector.shape_cast %126 : vector<8x1x32xf32> to vector<8x1x32xf32>
    %128 = vector.broadcast %127 : vector<8x1x32xf32> to vector<8x6x32xf32>
    %c0_67 = arith.constant 0 : index
    %c8 = arith.constant 8 : index
    %c0_68 = arith.constant 0 : index
    %129 = vector.load %arg5[%c0_67, %c8, %c0_68] : memref<8x14x32xf32, #tpu.memory_space<vmem>>, vector<8x6x32xf32>
    tpu.vector_store %arg5[%c0_67, %c8, %c0_68], %128 {strides = array<i32>} : memref<8x14x32xf32, #tpu.memory_space<vmem>>, vector<8x6x32xf32>,
    return
  }
  func.func @transform_0(%arg0: i32) -> (i32, i32) {
    %c0_i32 = arith.constant 0 : i32
    %c0_i32_0 = arith.constant 0 : i32
    return %arg0, %c0_i32 : i32, i32
  }
  func.func @transform_1(%arg0: i32) -> (i32, i32, i32) {
    %c0_i32 = arith.constant 0 : i32
    %c0_i32_0 = arith.constant 0 : i32
    %c0_i32_1 = arith.constant 0 : i32
    %c0_i32_2 = arith.constant 0 : i32
    return %c0_i32, %c0_i32_0, %c0_i32_1 : i32, i32, i32
  }
  func.func @transform_2(%arg0: i32) -> (i32, i32) {
    %c0_i32 = arith.constant 0 : i32
    %c0_i32_0 = arith.constant 0 : i32
    %c0_i32_1 = arith.constant 0 : i32
    return %c0_i32, %c0_i32_0 : i32, i32
  }
  func.func @transform_3(%arg0: i32) -> (i32, i32) {
    %c0_i32 = arith.constant 0 : i32
    %c0_i32_0 = arith.constant 0 : i32
    %c0_i32_1 = arith.constant 0 : i32
    return %c0_i32, %c0_i32_0 : i32, i32
  }
  func.func @transform_4(%arg0: i32) -> (i32, i32, i32) {
    %c0_i32 = arith.constant 0 : i32
    %c0_i32_0 = arith.constant 0 : i32
    %c0_i32_1 = arith.constant 0 : i32
    return %arg0, %c0_i32, %c0_i32_0 : i32, i32, i32
  }
}

module attributes {stable_mosaic.version = 11 : i64} {
  func.func @mapping_kernel(%arg0: i32, %arg1: memref<8x32xf32, #tpu.memory_space<vmem>>, %arg2: memref<8x32x32xf32, #tpu.memory_space<vmem>>, %arg3: memref<8x32xf32, #tpu.memory_space<vmem>>, %arg4: memref<1x32xf32, #tpu.memory_space<vmem>>, %arg5: memref<8x14x32xf32, #tpu.memory_space<vmem>>) attributes {dimension_semantics = [#tpu.dimension_semantics<parallel>], iteration_bounds = array<i64: 1>, scalar_prefetch = 0 : i64, scratch_operands = 0 : i64, tpu.core_type = #tpu.core_type<tc>, window_params = [{transform_indices = @transform_0, window_bounds = array<i64: 8, 32>}, {pipeline_mode = #tpu.pipeline_mode<synchronous>, transform_indices = @transform_1, window_bounds = array<i64: 8, 32, 32>}, {pipeline_mode = #tpu.pipeline_mode<synchronous>, transform_indices = @transform_2, window_bounds = array<i64: 8, 32>}, {pipeline_mode = #tpu.pipeline_mode<synchronous>, transform_indices = @transform_3, window_bounds = array<i64: 1, 32>}, {transform_indices = @transform_4, window_bounds = array<i64: 8, 14, 32>}]} {
    %c0 = arith.constant 0 : index
    %c0_0 = arith.constant 0 : index
    %0 = vector.load %arg1[%c0, %c0_0] : memref<8x32xf32, #tpu.memory_space<vmem>>, vector<8x32xf32>
    %1 = arith.mulf %0, %0 : vector<8x32xf32>
    %cst = arith.constant dense<0.000000e+00> : vector<8xf32>
    %2 = vector.multi_reduction <add>, %1, %cst [1] : vector<8x32xf32> to vector<8xf32>
    %3 = vector.shape_cast %2 : vector<8xf32> to vector<8x1xf32>
    %cst_1 = arith.constant 3.200000e+01 : f32
    %4 = vector.broadcast %cst_1 : f32 to vector<8x1xf32>
    %5 = arith.divf %3, %4 : vector<8x1xf32>
    %cst_2 = arith.constant 9.99999993E-9 : f32
    %6 = vector.broadcast %cst_2 : f32 to vector<8x1xf32>
    %7 = arith.addf %5, %6 : vector<8x1xf32>
    %8 = math.rsqrt %7 : vector<8x1xf32>
    %9 = vector.broadcast %8 : vector<8x1xf32> to vector<8x32xf32>
    %10 = arith.mulf %0, %9 : vector<8x32xf32>
    %c0_3 = arith.constant 0 : index
    %c0_4 = arith.constant 0 : index
    %c0_5 = arith.constant 0 : index
    %11 = vector.load %arg2[%c0_3, %c0_4, %c0_5] : memref<8x32x32xf32, #tpu.memory_space<vmem>>, vector<1x32x32xf32>
    %12 = vector.shape_cast %11 : vector<1x32x32xf32> to vector<32x32xf32>
    %cst_6 = arith.constant dense<0.000000e+00> : vector<8x32xf32>
    %13 = tpu.matmul %10, %12, %cst_6 {dimension_numbers = #tpu.dot_dimension_numbers<[1], [0], [0], [1], [0, 0, 1, 1], [], []>} : vector<8x32xf32>, vector<32x32xf32>, vector<8x32xf32> -> vector<8x32xf32>
    %c0_7 = arith.constant 0 : index
    %c0_8 = arith.constant 0 : index
    %14 = vector.load %arg3[%c0_7, %c0_8] : memref<8x32xf32, #tpu.memory_space<vmem>>, vector<1x32xf32>
    %15 = vector.shape_cast %14 : vector<1x32xf32> to vector<32xf32>
    %16 = vector.shape_cast %15 : vector<32xf32> to vector<1x32xf32>
    %17 = vector.broadcast %16 : vector<1x32xf32> to vector<8x32xf32>
    %18 = arith.addf %13, %17 : vector<8x32xf32>
    %cst_9 = arith.constant 0.000000e+00 : f32
    %19 = vector.broadcast %cst_9 : f32 to vector<8x32xf32>
    %20 = arith.cmpf oge, %18, %19 : vector<8x32xf32>
    %cst_10 = arith.constant 2.000000e-01 : f32
    %21 = vector.broadcast %cst_10 : f32 to vector<8x32xf32>
    %22 = arith.mulf %21, %18 : vector<8x32xf32>
    %23 = arith.select %20, %18, %22 : vector<8x32xi1>, vector<8x32xf32>
    %c1 = arith.constant 1 : index
    %c0_11 = arith.constant 0 : index
    %c0_12 = arith.constant 0 : index
    %24 = vector.load %arg2[%c1, %c0_11, %c0_12] : memref<8x32x32xf32, #tpu.memory_space<vmem>>, vector<1x32x32xf32>
    %25 = vector.shape_cast %24 : vector<1x32x32xf32> to vector<32x32xf32>
    %cst_13 = arith.constant dense<0.000000e+00> : vector<8x32xf32>
    %26 = tpu.matmul %23, %25, %cst_13 {dimension_numbers = #tpu.dot_dimension_numbers<[1], [0], [0], [1], [0, 0, 1, 1], [], []>} : vector<8x32xf32>, vector<32x32xf32>, vector<8x32xf32> -> vector<8x32xf32>
    %c1_14 = arith.constant 1 : index
    %c0_15 = arith.constant 0 : index
    %27 = vector.load %arg3[%c1_14, %c0_15] : memref<8x32xf32, #tpu.memory_space<vmem>>, vector<1x32xf32>
    %28 = vector.shape_cast %27 : vector<1x32xf32> to vector<32xf32>
    %29 = vector.shape_cast %28 : vector<32xf32> to vector<1x32xf32>
    %30 = vector.broadcast %29 : vector<1x32xf32> to vector<8x32xf32>
    %31 = arith.addf %26, %30 : vector<8x32xf32>
    %cst_16 = arith.constant 0.000000e+00 : f32
    %32 = vector.broadcast %cst_16 : f32 to vector<8x32xf32>
    %33 = arith.cmpf oge, %31, %32 : vector<8x32xf32>
    %cst_17 = arith.constant 2.000000e-01 : f32
    %34 = vector.broadcast %cst_17 : f32 to vector<8x32xf32>
    %35 = arith.mulf %34, %31 : vector<8x32xf32>
    %36 = arith.select %33, %31, %35 : vector<8x32xi1>, vector<8x32xf32>
    %c2 = arith.constant 2 : index
    %c0_18 = arith.constant 0 : index
    %c0_19 = arith.constant 0 : index
    %37 = vector.load %arg2[%c2, %c0_18, %c0_19] : memref<8x32x32xf32, #tpu.memory_space<vmem>>, vector<1x32x32xf32>
    %38 = vector.shape_cast %37 : vector<1x32x32xf32> to vector<32x32xf32>
    %cst_20 = arith.constant dense<0.000000e+00> : vector<8x32xf32>
    %39 = tpu.matmul %36, %38, %cst_20 {dimension_numbers = #tpu.dot_dimension_numbers<[1], [0], [0], [1], [0, 0, 1, 1], [], []>} : vector<8x32xf32>, vector<32x32xf32>, vector<8x32xf32> -> vector<8x32xf32>
    %c2_21 = arith.constant 2 : index
    %c0_22 = arith.constant 0 : index
    %40 = vector.load %arg3[%c2_21, %c0_22] : memref<8x32xf32, #tpu.memory_space<vmem>>, vector<1x32xf32>
    %41 = vector.shape_cast %40 : vector<1x32xf32> to vector<32xf32>
    %42 = vector.shape_cast %41 : vector<32xf32> to vector<1x32xf32>
    %43 = vector.broadcast %42 : vector<1x32xf32> to vector<8x32xf32>
    %44 = arith.addf %39, %43 : vector<8x32xf32>
    %cst_23 = arith.constant 0.000000e+00 : f32
    %45 = vector.broadcast %cst_23 : f32 to vector<8x32xf32>
    %46 = arith.cmpf oge, %44, %45 : vector<8x32xf32>
    %cst_24 = arith.constant 2.000000e-01 : f32
    %47 = vector.broadcast %cst_24 : f32 to vector<8x32xf32>
    %48 = arith.mulf %47, %44 : vector<8x32xf32>
    %49 = arith.select %46, %44, %48 : vector<8x32xi1>, vector<8x32xf32>
    %c3 = arith.constant 3 : index
    %c0_25 = arith.constant 0 : index
    %c0_26 = arith.constant 0 : index
    %50 = vector.load %arg2[%c3, %c0_25, %c0_26] : memref<8x32x32xf32, #tpu.memory_space<vmem>>, vector<1x32x32xf32>
    %51 = vector.shape_cast %50 : vector<1x32x32xf32> to vector<32x32xf32>
    %cst_27 = arith.constant dense<0.000000e+00> : vector<8x32xf32>
    %52 = tpu.matmul %49, %51, %cst_27 {dimension_numbers = #tpu.dot_dimension_numbers<[1], [0], [0], [1], [0, 0, 1, 1], [], []>} : vector<8x32xf32>, vector<32x32xf32>, vector<8x32xf32> -> vector<8x32xf32>
    %c3_28 = arith.constant 3 : index
    %c0_29 = arith.constant 0 : index
    %53 = vector.load %arg3[%c3_28, %c0_29] : memref<8x32xf32, #tpu.memory_space<vmem>>, vector<1x32xf32>
    %54 = vector.shape_cast %53 : vector<1x32xf32> to vector<32xf32>
    %55 = vector.shape_cast %54 : vector<32xf32> to vector<1x32xf32>
    %56 = vector.broadcast %55 : vector<1x32xf32> to vector<8x32xf32>
    %57 = arith.addf %52, %56 : vector<8x32xf32>
    %cst_30 = arith.constant 0.000000e+00 : f32
    %58 = vector.broadcast %cst_30 : f32 to vector<8x32xf32>
    %59 = arith.cmpf oge, %57, %58 : vector<8x32xf32>
    %cst_31 = arith.constant 2.000000e-01 : f32
    %60 = vector.broadcast %cst_31 : f32 to vector<8x32xf32>
    %61 = arith.mulf %60, %57 : vector<8x32xf32>
    %62 = arith.select %59, %57, %61 : vector<8x32xi1>, vector<8x32xf32>
    %c4 = arith.constant 4 : index
    %c0_32 = arith.constant 0 : index
    %c0_33 = arith.constant 0 : index
    %63 = vector.load %arg2[%c4, %c0_32, %c0_33] : memref<8x32x32xf32, #tpu.memory_space<vmem>>, vector<1x32x32xf32>
    %64 = vector.shape_cast %63 : vector<1x32x32xf32> to vector<32x32xf32>
    %cst_34 = arith.constant dense<0.000000e+00> : vector<8x32xf32>
    %65 = tpu.matmul %62, %64, %cst_34 {dimension_numbers = #tpu.dot_dimension_numbers<[1], [0], [0], [1], [0, 0, 1, 1], [], []>} : vector<8x32xf32>, vector<32x32xf32>, vector<8x32xf32> -> vector<8x32xf32>
    %c4_35 = arith.constant 4 : index
    %c0_36 = arith.constant 0 : index
    %66 = vector.load %arg3[%c4_35, %c0_36] : memref<8x32xf32, #tpu.memory_space<vmem>>, vector<1x32xf32>
    %67 = vector.shape_cast %66 : vector<1x32xf32> to vector<32xf32>
    %68 = vector.shape_cast %67 : vector<32xf32> to vector<1x32xf32>
    %69 = vector.broadcast %68 : vector<1x32xf32> to vector<8x32xf32>
    %70 = arith.addf %65, %69 : vector<8x32xf32>
    %cst_37 = arith.constant 0.000000e+00 : f32
    %71 = vector.broadcast %cst_37 : f32 to vector<8x32xf32>
    %72 = arith.cmpf oge, %70, %71 : vector<8x32xf32>
    %cst_38 = arith.constant 2.000000e-01 : f32
    %73 = vector.broadcast %cst_38 : f32 to vector<8x32xf32>
    %74 = arith.mulf %73, %70 : vector<8x32xf32>
    %75 = arith.select %72, %70, %74 : vector<8x32xi1>, vector<8x32xf32>
    %c5 = arith.constant 5 : index
    %c0_39 = arith.constant 0 : index
    %c0_40 = arith.constant 0 : index
    %76 = vector.load %arg2[%c5, %c0_39, %c0_40] : memref<8x32x32xf32, #tpu.memory_space<vmem>>, vector<1x32x32xf32>
    %77 = vector.shape_cast %76 : vector<1x32x32xf32> to vector<32x32xf32>
    %cst_41 = arith.constant dense<0.000000e+00> : vector<8x32xf32>
    %78 = tpu.matmul %75, %77, %cst_41 {dimension_numbers = #tpu.dot_dimension_numbers<[1], [0], [0], [1], [0, 0, 1, 1], [], []>} : vector<8x32xf32>, vector<32x32xf32>, vector<8x32xf32> -> vector<8x32xf32>
    %c5_42 = arith.constant 5 : index
    %c0_43 = arith.constant 0 : index
    %79 = vector.load %arg3[%c5_42, %c0_43] : memref<8x32xf32, #tpu.memory_space<vmem>>, vector<1x32xf32>
    %80 = vector.shape_cast %79 : vector<1x32xf32> to vector<32xf32>
    %81 = vector.shape_cast %80 : vector<32xf32> to vector<1x32xf32>
    %82 = vector.broadcast %81 : vector<1x32xf32> to vector<8x32xf32>
    %83 = arith.addf %78, %82 : vector<8x32xf32>
    %cst_44 = arith.constant 0.000000e+00 : f32
    %84 = vector.broadcast %cst_44 : f32 to vector<8x32xf32>
    %85 = arith.cmpf oge, %83, %84 : vector<8x32xf32>
    %cst_45 = arith.constant 2.000000e-01 : f32
    %86 = vector.broadcast %cst_45 : f32 to vector<8x32xf32>
    %87 = arith.mulf %86, %83 : vector<8x32xf32>
    %88 = arith.select %85, %83, %87 : vector<8x32xi1>, vector<8x32xf32>
    %c6 = arith.constant 6 : index
    %c0_46 = arith.constant 0 : index
    %c0_47 = arith.constant 0 : index
    %89 = vector.load %arg2[%c6, %c0_46, %c0_47] : memref<8x32x32xf32, #tpu.memory_space<vmem>>, vector<1x32x32xf32>
    %90 = vector.shape_cast %89 : vector<1x32x32xf32> to vector<32x32xf32>
    %cst_48 = arith.constant dense<0.000000e+00> : vector<8x32xf32>
    %91 = tpu.matmul %88, %90, %cst_48 {dimension_numbers = #tpu.dot_dimension_numbers<[1], [0], [0], [1], [0, 0, 1, 1], [], []>} : vector<8x32xf32>, vector<32x32xf32>, vector<8x32xf32> -> vector<8x32xf32>
    %c6_49 = arith.constant 6 : index
    %c0_50 = arith.constant 0 : index
    %92 = vector.load %arg3[%c6_49, %c0_50] : memref<8x32xf32, #tpu.memory_space<vmem>>, vector<1x32xf32>
    %93 = vector.shape_cast %92 : vector<1x32xf32> to vector<32xf32>
    %94 = vector.shape_cast %93 : vector<32xf32> to vector<1x32xf32>
    %95 = vector.broadcast %94 : vector<1x32xf32> to vector<8x32xf32>
    %96 = arith.addf %91, %95 : vector<8x32xf32>
    %cst_51 = arith.constant 0.000000e+00 : f32
    %97 = vector.broadcast %cst_51 : f32 to vector<8x32xf32>
    %98 = arith.cmpf oge, %96, %97 : vector<8x32xf32>
    %cst_52 = arith.constant 2.000000e-01 : f32
    %99 = vector.broadcast %cst_52 : f32 to vector<8x32xf32>
    %100 = arith.mulf %99, %96 : vector<8x32xf32>
    %101 = arith.select %98, %96, %100 : vector<8x32xi1>, vector<8x32xf32>
    %c7 = arith.constant 7 : index
    %c0_53 = arith.constant 0 : index
    %c0_54 = arith.constant 0 : index
    %102 = vector.load %arg2[%c7, %c0_53, %c0_54] : memref<8x32x32xf32, #tpu.memory_space<vmem>>, vector<1x32x32xf32>
    %103 = vector.shape_cast %102 : vector<1x32x32xf32> to vector<32x32xf32>
    %cst_55 = arith.constant dense<0.000000e+00> : vector<8x32xf32>
    %104 = tpu.matmul %101, %103, %cst_55 {dimension_numbers = #tpu.dot_dimension_numbers<[1], [0], [0], [1], [0, 0, 1, 1], [], []>} : vector<8x32xf32>, vector<32x32xf32>, vector<8x32xf32> -> vector<8x32xf32>
    %c7_56 = arith.constant 7 : index
    %c0_57 = arith.constant 0 : index
    %105 = vector.load %arg3[%c7_56, %c0_57] : memref<8x32xf32, #tpu.memory_space<vmem>>, vector<1x32xf32>
    %106 = vector.shape_cast %105 : vector<1x32xf32> to vector<32xf32>
    %107 = vector.shape_cast %106 : vector<32xf32> to vector<1x32xf32>
    %108 = vector.broadcast %107 : vector<1x32xf32> to vector<8x32xf32>
    %109 = arith.addf %104, %108 : vector<8x32xf32>
    %cst_58 = arith.constant 0.000000e+00 : f32
    %110 = vector.broadcast %cst_58 : f32 to vector<8x32xf32>
    %111 = arith.cmpf oge, %109, %110 : vector<8x32xf32>
    %cst_59 = arith.constant 2.000000e-01 : f32
    %112 = vector.broadcast %cst_59 : f32 to vector<8x32xf32>
    %113 = arith.mulf %112, %109 : vector<8x32xf32>
    %114 = arith.select %111, %109, %113 : vector<8x32xi1>, vector<8x32xf32>
    %cst_60 = arith.constant 1.41421354 : f32
    %115 = vector.broadcast %cst_60 : f32 to vector<8x32xf32>
    %116 = arith.mulf %114, %115 : vector<8x32xf32>
    %c0_61 = arith.constant 0 : index
    %c0_62 = arith.constant 0 : index
    %117 = vector.load %arg4[%c0_61, %c0_62] : memref<1x32xf32, #tpu.memory_space<vmem>>, vector<1x32xf32>
    %cst_63 = arith.constant 0.707106769 : f32
    %118 = vector.broadcast %cst_63 : f32 to vector<8x32xf32>
    %119 = arith.mulf %118, %114 : vector<8x32xf32>
    %120 = vector.broadcast %117 : vector<1x32xf32> to vector<8x32xf32>
    %121 = arith.addf %120, %119 : vector<8x32xf32>
    %122 = vector.shape_cast %121 : vector<8x32xf32> to vector<8x1x32xf32>
    %123 = vector.shape_cast %122 : vector<8x1x32xf32> to vector<8x1x32xf32>
    %124 = vector.broadcast %123 : vector<8x1x32xf32> to vector<8x8x32xf32>
    %c0_64 = arith.constant 0 : index
    %c0_65 = arith.constant 0 : index
    %c0_66 = arith.constant 0 : index
    %125 = vector.load %arg5[%c0_64, %c0_65, %c0_66] : memref<8x14x32xf32, #tpu.memory_space<vmem>>, vector<8x8x32xf32>
    tpu.vector_store %arg5[%c0_64, %c0_65, %c0_66], %124 {strides = array<i32>} : memref<8x14x32xf32, #tpu.memory_space<vmem>>, vector<8x8x32xf32>,
    %126 = vector.shape_cast %116 : vector<8x32xf32> to vector<8x1x32xf32>
    %127 = vector.shape_cast %126 : vector<8x1x32xf32> to vector<8x1x32xf32>
    %128 = vector.broadcast %127 : vector<8x1x32xf32> to vector<8x6x32xf32>
    %c0_67 = arith.constant 0 : index
    %c8 = arith.constant 8 : index
    %c0_68 = arith.constant 0 : index
    %129 = vector.load %arg5[%c0_67, %c8, %c0_68] : memref<8x14x32xf32, #tpu.memory_space<vmem>>, vector<8x6x32xf32>
    tpu.vector_store %arg5[%c0_67, %c8, %c0_68], %128 {strides = array<i32>} : memref<8x14x32xf32, #tpu.memory_space<vmem>>, vector<8x6x32xf32>,
    return
  }
  func.func @transform_0(%arg0: i32) -> (i32, i32) {
    %c0_i32 = arith.constant 0 : i32
    %c0_i32_0 = arith.constant 0 : i32
    return %arg0, %c0_i32 : i32, i32
  }
  func.func @transform_1(%arg0: i32) -> (i32, i32, i32) {
    %c0_i32 = arith.constant 0 : i32
    %c0_i32_0 = arith.constant 0 : i32
    %c0_i32_1 = arith.constant 0 : i32
    %c0_i32_2 = arith.constant 0 : i32
    return %c0_i32, %c0_i32_0, %c0_i32_1 : i32, i32, i32
  }
  func.func @transform_2(%arg0: i32) -> (i32, i32) {
    %c0_i32 = arith.constant 0 : i32
    %c0_i32_0 = arith.constant 0 : i32
    %c0_i32_1 = arith.constant 0 : i32
    return %c0_i32, %c0_i32_0 : i32, i32
  }
  func.func @transform_3(%arg0: i32) -> (i32, i32) {
    %c0_i32 = arith.constant 0 : i32
    %c0_i32_0 = arith.constant 0 : i32
    %c0_i32_1 = arith.constant 0 : i32
    return %c0_i32, %c0_i32_0 : i32, i32
  }
  func.func @transform_4(%arg0: i32) -> (i32, i32, i32) {
    %c0_i32 = arith.constant 0 : i32
    %c0_i32_0 = arith.constant 0 : i32
    %c0_i32_1 = arith.constant 0 : i32
    return %arg0, %c0_i32, %c0_i32_0 : i32, i32, i32
  }
}

</mosaic_0001>

<bundles_post_ra>
// kernel: tpu_custom_call.1
= control target key start
LH: loop header
LB: loop body
LE: loop exit
PB: predicated region body
PF: predicated region fallthrough
CT: control target
= control target key end

     0   :  { %9 = vsyncpa [#allocation3], 0  ;;  %s1350_s0 = inlined_call_operand.hbm [shape: f32[8,32], index: 0, kind: input, shape index: {}]   ;;  %s1351_s1 = inlined_call_operand.hbm [shape: f32[8,32,32], index: 1, kind: input, shape index: {}]   ;;  %s1352_s2 = inlined_call_operand.hbm [shape: f32[8,32], index: 2, kind: input, shape index: {}]   ;;  %s1353_s3 = inlined_call_operand.vmem [shape: f32[1,32], index: 3, kind: input, shape index: {}]   ;;  %s1354_s4 = inlined_call_operand.vmem [shape: f32[8,14,32], index: 4, kind: output, shape index: {}]  }
   0x1   :  { %10 = vsyncpa [#allocation5], 0  ;;  %s1184_s15 = smov [#allocation4]  }
   0x2   :  { %s26_s16 = sshll.u32 %s1184_s15, 4  ;;  %s27_s16 = int_to_ptr.vmem [resolvable:$true] %s26_s16 }
   0x3   :  { %s1128_s17 = scalar_lea.vmem %s27_s16, 4096  ;;  %p1133_p1 = scmp.lt.s32.totalorder %s27_s16, %s27_s16 }
   0x4   :  { %p1129_p0 = scmp.ne.s32.totalorder %s27_s16, %s1128_s17  ;;  %p1134_p2 = scmp.lt.s32.totalorder %s1128_s17, %s1128_s17 }
   0x6   :  { %p1135_p3 = por %p1134_p2, %p1133_p1 }
   0x8   :  { %p1136_p4 = pnand %p1135_p3, %p1129_p0 }
   0xa   :  { %1139 = shalt.err (!%p1136_p4)
}
   0xb   :  { %s1185_s18 = smov 128   ;;  %s1186_s19 = smov 8  }
   0xc   :  { %32 = dma.hbm_to_vmem [thread:$0]  %s1351_s1, 4096, %s27_s16, [#allocation5], %s1185_s18, %s1185_s18, %s1186_s19  }
   0xd   :  { %s1187_s22 = smov [#allocation2]   ;;  %s1188_s24 = smov [#allocation6]  }
   0xe   :  { %s17_s23 = sshll.u32 %s1187_s22, 4  ;;  %s39_s25 = sshll.u32 %s1188_s24, 4  ;;  %s18_s23 = int_to_ptr.vmem [resolvable:$true] %s17_s23  ;;  %s40_s25 = int_to_ptr.vmem [resolvable:$true] %s39_s25 }
   0xf   :  { %s1148_s26 = scalar_lea.vmem %s18_s23, 128  ;;  %p1153_p6 = scmp.lt.s32.totalorder %s18_s23, %s18_s23 }
  0x10   :  { %p1149_p5 = scmp.ne.s32.totalorder %s18_s23, %s1148_s26  ;;  %p1154_p7 = scmp.lt.s32.totalorder %s1148_s26, %s1148_s26 }
  0x12   :  { %p1155_p8 = por %p1154_p7, %p1153_p6 }
  0x14   :  { %p1156_p9 = pnand %p1155_p8, %p1149_p5 }
  0x16   :  { %1159 = shalt.err (!%p1156_p9)
}
  0x17   :  { %20 = dma.hbm_to_vmem [thread:$0]  %s1350_s0, 128, %s18_s23, [#allocation3]  }
  0x18   :  { %s1168_s29 = scalar_lea.vmem %s40_s25, 128  ;;  %p1173_p11 = scmp.lt.s32.totalorder %s40_s25, %s40_s25 }
  0x19   :  { %p1169_p10 = scmp.ne.s32.totalorder %s40_s25, %s1168_s29  ;;  %p1174_p12 = scmp.lt.s32.totalorder %s1168_s29, %s1168_s29 }
  0x1b   :  { %p1175_p13 = por %p1174_p12, %p1173_p11 }
  0x1d   :  { %p1176_p0 = pnand %p1175_p13, %p1169_p10 }
  0x1f   :  { %1179 = shalt.err (!%p1176_p0)
}
  0x20   :  { %42 = dma.hbm_to_vmem [thread:$0]  %s1352_s2, 128, %s40_s25, [#allocation5]  }
  0x21   :  { %1180 = dma.done.wait [#allocation3], 128  }
  0x22   :  { %1181 = vsyncadd [#allocation3], 4294967168 }
  0x23   :  { %1182 = dma.done.wait [#allocation5], 4224  }
  0x24   :  { %1183 = vsyncadd [#allocation5], 4294963072  ;;  %v54_v0 = vld [vmem:[#allocation2] sm:$0xff]  ;;  %vm56_vm0 = vcmask 261120   ;;  %v1189_v4 = vmov 0.0   ;;  %v67_v5 = vld [vmem:[#allocation4 + $0x10] sm:$0xff] }
  0x25   :  { %v55_v1 = vmul.f32 %v54_v0, %v54_v0  ;;  %v68_v3 = vld [vmem:[#allocation4 + $0x18] sm:$0xff]  ;;  %1022 = vmatprep.subr.mxu0 %v1189_v4  ;;  %vm1190_vm1 = vmmov 0   ;;  %1033 = vmatprep.subr.mxu1 %v1189_v4  ;;  %v66_v6 = vld [vmem:[#allocation4 + $0x8] sm:$0xff]  ;;  %v65_v7 = vld [vmem:[#allocation4] sm:$0xff]  ;;  %vm950_vm10 = vcmask 259072  }
  0x26   :  { %1030 = vmatprep.mubr.msk.f32.mxu0 %vm1190_vm1, %v1189_v4  ;;  %1023 = vmatpush3.msra.mxu0 %v68_v3  ;;  %v154_v8 = vld [vmem:[#allocation4 + $0x38] sm:$0xff]  ;;  %v153_v14 = vld [vmem:[#allocation4 + $0x30] sm:$0xff]  ;;  %v152_v15 = vld [vmem:[#allocation4 + $0x28] sm:$0xff] }
  0x27   :  { %v57_v2 = vsel %vm56_vm0, %v55_v1, 0.0  ;;  %1024 = vmatprep.subr.mxu0 %v1189_v4  ;;  %1041 = vmatprep.mubr.msk.f32.mxu1 %vm1190_vm1, %v1189_v4  ;;  %v151_v16 = vld [vmem:[#allocation4 + $0x20] sm:$0xff]  ;;  %v240_v17 = vld [vmem:[#allocation4 + $0x58] sm:$0xff]  ;;  %v239_v24 = vld [vmem:[#allocation4 + $0x50] sm:$0xff] }
  0x28   :  { %58 = vadd.xlane.f32.xlu0 %v57_v2  ;;  %1025 = vmatpush3.msra.mxu0 %v67_v5  ;;  %v965_v18 = vld [vmem:[#allocation6] ss:$0 sm:$0xff]  ;;  %v238_v25 = vld [vmem:[#allocation4 + $0x48] sm:$0xff]  ;;  %v326_v27 = vld [vmem:[#allocation4 + $0x78] sm:$0xff] }
  0x29   :  { %1026 = vmatprep.subr.mxu0 %v1189_v4  ;;  %1034 = vmatpush3.msra.mxu1 %v154_v8  ;;  %v237_v26 = vld [vmem:[#allocation4 + $0x40] sm:$0xff]  ;;  %v325_v34 = vld [vmem:[#allocation4 + $0x70] sm:$0xff]  ;;  %v324_v35 = vld [vmem:[#allocation4 + $0x68] sm:$0xff] }
  0x2a   :  { %1027 = vmatpush3.msra.mxu0 %v66_v6  ;;  %1035 = vmatprep.subr.mxu1 %v1189_v4  ;;  %v967_v28 = vld [vmem:[#allocation6 + $0x1] ss:$0 sm:$0xff]  ;;  %v412_v37 = vld [vmem:[#allocation4 + $0x98] sm:$0xff]  ;;  %v969_v38 = vld [vmem:[#allocation6 + $0x2] ss:$0 sm:$0xff] }
  0x2b   :  { %1028 = vmatprep.subr.mxu0 %v1189_v4  ;;  %1036 = vmatpush3.msra.mxu1 %v153_v14  ;;  %v323_v36 = vld [vmem:[#allocation4 + $0x60] sm:$0xff]  ;;  %v411_v44 = vld [vmem:[#allocation4 + $0x90] sm:$0xff]  ;;  %v410_v45 = vld [vmem:[#allocation4 + $0x88] sm:$0xff] }
  0x2c   :  { %1029 = vmatpush3.msra.mxu0 %v65_v7  ;;  %1037 = vmatprep.subr.mxu1 %v1189_v4  ;;  %v409_v46 = vld [vmem:[#allocation4 + $0x80] sm:$0xff]  ;;  %v498_v47 = vld [vmem:[#allocation4 + $0xb8] sm:$0xff]  ;;  %v497_v54 = vld [vmem:[#allocation4 + $0xb0] sm:$0xff] }
  0x2d   :  { %1044 = vmatprep.subr.mxu0 %v1189_v4  ;;  %1038 = vmatpush3.msra.mxu1 %v152_v15  ;;  %v971_v48 = vld [vmem:[#allocation6 + $0x3] ss:$0 sm:$0xff]  ;;  %v496_v55 = vld [vmem:[#allocation4 + $0xa8] sm:$0xff]  ;;  %v584_v57 = vld [vmem:[#allocation4 + $0xd8] sm:$0xff] }
  0x2e   :  { %1039 = vmatprep.subr.mxu1 %v1189_v4  ;;  %v495_v56 = vld [vmem:[#allocation4 + $0xa0] sm:$0xff]  ;;  %v582_v1 = vld [vmem:[#allocation4 + $0xc8] sm:$0xff]  ;;  %v670_v3 = vld [vmem:[#allocation4 + $0xf8] sm:$0xff] }
  0x2f   :  { %1040 = vmatpush3.msra.mxu1 %v151_v16  ;;  %v973_v58 = vld [vmem:[#allocation6 + $0x4] ss:$0 sm:$0xff]  ;;  %v975_v5 = vld [vmem:[#allocation6 + $0x5] ss:$0 sm:$0xff]  ;;  %v977_v14 = vld [vmem:[#allocation6 + $0x6] ss:$0 sm:$0xff] }
  0x30   :  { %1055 = vmatprep.subr.mxu1 %v1189_v4  ;;  %v581_v2 = vld [vmem:[#allocation4 + $0xc0] sm:$0xff] }
  0xb1   :  { %v59_v9 = vpop.xlane.xlu0 %58 }
  0xb2   :  { %v61_v10 = vmul.f32 0.03125, %v59_v9 }
  0xb4   :  { %v62_v11 = vadd.f32 1e-08, %v61_v10 }
  0xb6   :  { %1118 = vrsqrt.f32 %v62_v11  ;;  %v669_v11 = vld [vmem:[#allocation4 + $0xf0] sm:$0xff] }
  0xc3   :  { %v1119_v12 = vpop.eup %1118 }
  0xc4   :  { %v64_v13 = vmul.f32 %v1119_v12, %v54_v0  ;;  %v583_v0 = vld [vmem:[#allocation4 + $0xd0] sm:$0xff]  ;;  %v668_v12 = vld [vmem:[#allocation4 + $0xe8] sm:$0xff] }
  0xc6   :  { %1031 = vmatmul.mubr.msk.f32.vlgmr.msra.gmra.mxu0 %vm56_vm0, %v64_v13  ;;  %v667_v13 = vld [vmem:[#allocation4 + $0xe0] sm:$0xff] }
  0xc7   :  { %1052 = vmatprep.mubr.msk.f32.mxu0 %vm1190_vm1, %v1189_v4  ;;  %1045 = vmatpush3.msra.mxu0 %v240_v17 }
  0xc8   :  { %1046 = vmatprep.subr.mxu0 %v1189_v4 }
  0xc9   :  { %1047 = vmatpush3.msra.mxu0 %v239_v24 }
  0xca   :  { %1048 = vmatprep.subr.mxu0 %v1189_v4 }
  0xcb   :  { %1049 = vmatpush3.msra.mxu0 %v238_v25 }
  0xcc   :  { %1050 = vmatprep.subr.mxu0 %v1189_v4 }
  0xcd   :  { %1051 = vmatpush3.msra.mxu0 %v237_v26 }
  0xce   :  { %1066 = vmatprep.subr.mxu0 %v1189_v4 }
 0x186   :  { %v143_v19 = vpop.f32.mrf.mxu0 }
 0x187   :  { %v144_v20 = vadd.f32 %v965_v18, %v143_v19 }
 0x188   :  { %v1032_v21 = vpop.f32.mrf.mxu0 }
 0x189   :  { %vm147_vm2 = vcmp.ge.f32.partialorder %v144_v20, 0.0  ;;  %v148_v22 = vmul.f32 0.2, %v144_v20 }
 0x18b   :  { %v149_v23 = vsel %vm147_vm2, %v144_v20, %v148_v22  ;;  %v1191_v20 = vmov 1966171168   ;;  %v767_v22 = vlaneseq }
 0x18c   :  { %1042 = vmatmul.mubr.msk.f32.vlgmr.msra.gmra.mxu1 %vm56_vm0, %v149_v23  ;;  %v765_v21 = vunpack.c.l.s4 %v1191_v20  ;;  %v979_v23 = vld [vmem:[#allocation6 + $0x7] ss:$0 sm:$0xff] }
 0x18d   :  { %1063 = vmatprep.mubr.msk.f32.mxu1 %vm1190_vm1, %v1189_v4  ;;  %1056 = vmatpush3.msra.mxu1 %v326_v27  ;;  %v768_v26 = vshrl.u32 %v767_v22, 7 }
 0x18e   :  { %1057 = vmatprep.subr.mxu1 %v1189_v4  ;;  %v766_v25 = vunpack.c.0.s8 %v765_v21 }
 0x18f   :  { %1058 = vmatpush3.msra.mxu1 %v325_v34 }
 0x190   :  { %1059 = vmatprep.subr.mxu1 %v1189_v4 }
 0x191   :  { %1060 = vmatpush3.msra.mxu1 %v324_v35 }
 0x192   :  { %1061 = vmatprep.subr.mxu1 %v1189_v4 }
 0x193   :  { %1062 = vmatpush3.msra.mxu1 %v323_v36 }
 0x194   :  { %1077 = vmatprep.subr.mxu1 %v1189_v4 }
 0x24c   :  { %v229_v29 = vpop.f32.mrf.mxu1 }
 0x24d   :  { %v230_v30 = vadd.f32 %v967_v28, %v229_v29  ;;  %v769_v29 = vsub.s32 %v766_v25, %v768_v26 }
 0x24e   :  { %v1043_v31 = vpop.f32.mrf.mxu1 }
 0x24f   :  { %vm233_vm3 = vcmp.ge.f32.partialorder %v230_v30, 0.0  ;;  %v234_v32 = vmul.f32 0.2, %v230_v30  ;;  %v981_v31 = vld [vmem:[%s1353_s3] ss:$0 sm:$0xff] }
 0x251   :  { %v235_v33 = vsel %vm233_vm3, %v230_v30, %v234_v32 }
 0x252   :  { %1053 = vmatmul.mubr.msk.f32.vlgmr.msra.gmra.mxu0 %vm56_vm0, %v235_v33 }
 0x253   :  { %1074 = vmatprep.mubr.msk.f32.mxu0 %vm1190_vm1, %v1189_v4  ;;  %1067 = vmatpush3.msra.mxu0 %v412_v37  ;;  %v814_v37 = vsub.s32 0, %v768_v26 }
 0x254   :  { %1068 = vmatprep.subr.mxu0 %v1189_v4 }
 0x255   :  { %1069 = vmatpush3.msra.mxu0 %v411_v44 }
 0x256   :  { %1070 = vmatprep.subr.mxu0 %v1189_v4 }
 0x257   :  { %1071 = vmatpush3.msra.mxu0 %v410_v45 }
 0x258   :  { %1072 = vmatprep.subr.mxu0 %v1189_v4 }
 0x259   :  { %1073 = vmatpush3.msra.mxu0 %v409_v46 }
 0x25a   :  { %1088 = vmatprep.subr.mxu0 %v1189_v4 }
 0x312   :  { %v315_v39 = vpop.f32.mrf.mxu0 }
 0x313   :  { %v316_v40 = vadd.f32 %v969_v38, %v315_v39 }
 0x314   :  { %v1054_v41 = vpop.f32.mrf.mxu0 }
 0x315   :  { %vm319_vm4 = vcmp.ge.f32.partialorder %v316_v40, 0.0  ;;  %v320_v42 = vmul.f32 0.2, %v316_v40 }
 0x317   :  { %v321_v43 = vsel %vm319_vm4, %v316_v40, %v320_v42 }
 0x318   :  { %1064 = vmatmul.mubr.msk.f32.vlgmr.msra.gmra.mxu1 %vm56_vm0, %v321_v43 }
 0x319   :  { %1085 = vmatprep.mubr.msk.f32.mxu1 %vm1190_vm1, %v1189_v4  ;;  %1078 = vmatpush3.msra.mxu1 %v498_v47 }
 0x31a   :  { %1079 = vmatprep.subr.mxu1 %v1189_v4 }
 0x31b   :  { %1080 = vmatpush3.msra.mxu1 %v497_v54 }
 0x31c   :  { %1081 = vmatprep.subr.mxu1 %v1189_v4 }
 0x31d   :  { %1082 = vmatpush3.msra.mxu1 %v496_v55 }
 0x31e   :  { %1083 = vmatprep.subr.mxu1 %v1189_v4 }
 0x31f   :  { %1084 = vmatpush3.msra.mxu1 %v495_v56 }
 0x320   :  { %1099 = vmatprep.subr.mxu1 %v1189_v4 }
 0x3d8   :  { %v401_v49 = vpop.f32.mrf.mxu1 }
 0x3d9   :  { %v402_v50 = vadd.f32 %v971_v48, %v401_v49 }
 0x3da   :  { %v1065_v51 = vpop.f32.mrf.mxu1 }
 0x3db   :  { %vm405_vm5 = vcmp.ge.f32.partialorder %v402_v50, 0.0  ;;  %v406_v52 = vmul.f32 0.2, %v402_v50 }
 0x3dd   :  { %v407_v53 = vsel %vm405_vm5, %v402_v50, %v406_v52 }
 0x3de   :  { %1075 = vmatmul.mubr.msk.f32.vlgmr.msra.gmra.mxu0 %vm56_vm0, %v407_v53 }
 0x3df   :  { %1096 = vmatprep.mubr.msk.f32.mxu0 %vm1190_vm1, %v1189_v4  ;;  %1089 = vmatpush3.msra.mxu0 %v584_v57 }
 0x3e0   :  { %1090 = vmatprep.subr.mxu0 %v1189_v4 }
 0x3e1   :  { %1091 = vmatpush3.msra.mxu0 %v583_v0 }
 0x3e2   :  { %1092 = vmatprep.subr.mxu0 %v1189_v4 }
 0x3e3   :  { %1093 = vmatpush3.msra.mxu0 %v582_v1 }
 0x3e4   :  { %1094 = vmatprep.subr.mxu0 %v1189_v4 }
 0x3e5   :  { %1095 = vmatpush3.msra.mxu0 %v581_v2 }
 0x49e   :  { %v487_v59 = vpop.f32.mrf.mxu0 }
 0x49f   :  { %v488_v60 = vadd.f32 %v973_v58, %v487_v59 }
 0x4a0   :  { %v1076_v61 = vpop.f32.mrf.mxu0 }
 0x4a1   :  { %vm491_vm6 = vcmp.ge.f32.partialorder %v488_v60, 0.0  ;;  %v492_v62 = vmul.f32 0.2, %v488_v60 }
 0x4a3   :  { %v493_v63 = vsel %vm491_vm6, %v488_v60, %v492_v62 }
 0x4a4   :  { %1086 = vmatmul.mubr.msk.f32.vlgmr.msra.gmra.mxu1 %vm56_vm0, %v493_v63 }
 0x4a5   :  { %1107 = vmatprep.mubr.msk.f32.mxu1 %vm1190_vm1, %v1189_v4  ;;  %1100 = vmatpush3.msra.mxu1 %v670_v3 }
 0x4a6   :  { %1101 = vmatprep.subr.mxu1 %v1189_v4 }
 0x4a7   :  { %1102 = vmatpush3.msra.mxu1 %v669_v11 }
 0x4a8   :  { %1103 = vmatprep.subr.mxu1 %v1189_v4 }
 0x4a9   :  { %1104 = vmatpush3.msra.mxu1 %v668_v12 }
 0x4aa   :  { %1105 = vmatprep.subr.mxu1 %v1189_v4 }
 0x4ab   :  { %1106 = vmatpush3.msra.mxu1 %v667_v13 }
 0x564   :  { %v573_v6 = vpop.f32.mrf.mxu1 }
 0x565   :  { %v574_v7 = vadd.f32 %v975_v5, %v573_v6 }
 0x566   :  { %v1087_v8 = vpop.f32.mrf.mxu1 }
 0x567   :  { %vm577_vm7 = vcmp.ge.f32.partialorder %v574_v7, 0.0  ;;  %v578_v9 = vmul.f32 0.2, %v574_v7 }
 0x569   :  { %v579_v10 = vsel %vm577_vm7, %v574_v7, %v578_v9 }
 0x56a   :  { %1097 = vmatmul.mubr.msk.f32.vlgmr.msra.gmra.mxu0 %vm56_vm0, %v579_v10 }
 0x62a   :  { %v659_v15 = vpop.f32.mrf.mxu0 }
 0x62b   :  { %v660_v16 = vadd.f32 %v977_v14, %v659_v15 }
 0x62c   :  { %v1098_v17 = vpop.f32.mrf.mxu0 }
 0x62d   :  { %vm663_vm8 = vcmp.ge.f32.partialorder %v660_v16, 0.0  ;;  %v664_v18 = vmul.f32 0.2, %v660_v16 }
 0x62f   :  { %v665_v19 = vsel %vm663_vm8, %v660_v16, %v664_v18 }
 0x630   :  { %1108 = vmatmul.mubr.msk.f32.vlgmr.msra.gmra.mxu1 %vm56_vm0, %v665_v19 }
 0x6f0   :  { %v745_v24 = vpop.f32.mrf.mxu1 }
 0x6f1   :  { %v746_v27 = vadd.f32 %v979_v23, %v745_v24 }
 0x6f2   :  { %v1109_v4 = vpop.f32.mrf.mxu1 }
 0x6f3   :  { %vm749_vm9 = vcmp.ge.f32.partialorder %v746_v27, 0.0  ;;  %v750_v28 = vmul.f32 0.2, %v746_v27 }
 0x6f5   :  { %v751_v30 = vsel %vm749_vm9, %v746_v27, %v750_v28 }
 0x6f6   :  { %v752_v32 = vmul.f32 1.4142135, %v751_v30  ;;  %v754_v33 = vmul.f32 0.70710677, %v751_v30 }
 0x6f8   :  { %v761_v34 = vadd.f32 %v981_v31, %v754_v33  ;;  %v861_v35 = vcombine.high %v752_v32, %v752_v32  ;;  %v868_v36 = vrot.slane %v752_v32, %v769_v29 }
 0x6fa   :  { %v763_v38 = vcombine.high %v761_v34, %v761_v34  ;;  %v770_v39 = vrot.slane %v761_v34, %v769_v29  ;;  %v875_v40 = vrot.slane %v861_v35, %v769_v29  ;;  %v876_v41 = vcombine.high %v868_v36, %v868_v36 }
 0x6fb   :  { %v884_v42 = vrot.slane %v868_v36, %v769_v29 }
 0x6fc   :  { %v777_v43 = vrot.slane %v763_v38, %v769_v29  ;;  %v778_v44 = vcombine.high %v770_v39, %v770_v39  ;;  %v786_v45 = vrot.slane %v770_v39, %v769_v29  ;;  %v877_v46 = vcombine.high %v875_v40, %v875_v40 }
 0x6fd   :  { %v891_v47 = vrot.slane %v875_v40, %v769_v29  ;;  %v898_v48 = vrot.slane %v876_v41, %v769_v29  ;;  %v906_v49 = vcombine.high %v884_v42, %v884_v42  ;;  %v913_v50 = vrot.slane %v884_v42, %v814_v37 }
 0x6fe   :  { %v779_v51 = vcombine.high %v777_v43, %v777_v43  ;;  %v793_v52 = vrot.slane %v777_v43, %v769_v29  ;;  %v800_v53 = vrot.slane %v778_v44, %v769_v29  ;;  %v808_v54 = vcombine.high %v786_v45, %v786_v45 }
 0x6ff   :  { %v815_v55 = vrot.slane %v786_v45, %v814_v37  ;;  %v905_v56 = vrot.slane %v877_v46, %v769_v29  ;;  %v907_v57 = vcombine.high %v891_v47, %v891_v47  ;;  %v908_v58 = vcombine.high %v898_v48, %v898_v48  ;;  %951 = vst.msk [vmem:[%s1354_s4 + $0x8] sm:$0x3f] %vm950_vm10, %v913_v50 }
 0x700   :  { %v807_v59 = vrot.slane %v779_v51, %v769_v29  ;;  %v809_v60 = vcombine.high %v793_v52, %v793_v52  ;;  %v810_v61 = vcombine.high %v800_v53, %v800_v53  ;;  %v819_v62 = vrot.slane %v800_v53, %v814_v37 }
 0x701   :  { %v823_v63 = vrot.slane %v808_v54, %v814_v37  ;;  %v831_v0 = vrot.slane %v793_v52, %v814_v37  ;;  %852 = vst.msk [vmem:[%s1354_s4] sm:$0xff] %vm56_vm0, %v815_v55  ;;  %v909_v1 = vcombine.high %v905_v56, %v905_v56  ;;  %v917_v2 = vrot.slane %v898_v48, %v814_v37 }
 0x702   :  { %v811_v3 = vcombine.high %v807_v59, %v807_v59  ;;  %v827_v5 = vrot.slane %v810_v61, %v814_v37  ;;  %v835_v6 = vrot.slane %v807_v59, %v814_v37  ;;  %v839_v7 = vrot.slane %v809_v60, %v814_v37  ;;  %853 = vst.msk [vmem:[%s1354_s4 + $0x10] sm:$0xff] %vm56_vm0, %v819_v62 }
 0x703   :  { %854 = vst.msk [vmem:[%s1354_s4 + $0x20] sm:$0xff] %vm56_vm0, %v823_v63  ;;  %856 = vst.msk [vmem:[%s1354_s4 + $0x40] sm:$0xff] %vm56_vm0, %v831_v0  ;;  %v921_v8 = vrot.slane %v906_v49, %v814_v37  ;;  %v925_v9 = vrot.slane %v908_v58, %v814_v37  ;;  %v929_v10 = vrot.slane %v891_v47, %v814_v37 }
 0x704   :  { %v933_v11 = vrot.slane %v905_v56, %v814_v37  ;;  %952 = vst.msk [vmem:[%s1354_s4 + $0x18] sm:$0x3f] %vm950_vm10, %v917_v2  ;;  %v843_v12 = vrot.slane %v811_v3, %v814_v37  ;;  %v937_v13 = vrot.slane %v907_v57, %v814_v37  ;;  %v941_v14 = vrot.slane %v909_v1, %v814_v37 }
 0x705   :  { %855 = vst.msk [vmem:[%s1354_s4 + $0x30] sm:$0xff] %vm56_vm0, %v827_v5  ;;  %857 = vst.msk [vmem:[%s1354_s4 + $0x50] sm:$0xff] %vm56_vm0, %v835_v6 }
 0x706   :  { %858 = vst.msk [vmem:[%s1354_s4 + $0x60] sm:$0xff] %vm56_vm0, %v839_v7  ;;  %859 = vst.msk [vmem:[%s1354_s4 + $0x70] sm:$0xff] %vm56_vm0, %v843_v12 }
 0x707   :  { %953 = vst.msk [vmem:[%s1354_s4 + $0x28] sm:$0x3f] %vm950_vm10, %v921_v8  ;;  %954 = vst.msk [vmem:[%s1354_s4 + $0x38] sm:$0x3f] %vm950_vm10, %v925_v9 }
 0x708   :  { %955 = vst.msk [vmem:[%s1354_s4 + $0x48] sm:$0x3f] %vm950_vm10, %v929_v10  ;;  %956 = vst.msk [vmem:[%s1354_s4 + $0x58] sm:$0x3f] %vm950_vm10, %v933_v11 }
 0x709   :  { %957 = vst.msk [vmem:[%s1354_s4 + $0x68] sm:$0x3f] %vm950_vm10, %v937_v13  ;;  %958 = vst.msk [vmem:[%s1354_s4 + $0x78] sm:$0x3f] %vm950_vm10, %v941_v14 }
 0x70a   :  { %963 = vsyncpa [#allocation3], 1 }
 0x70b   :  { %964 = vsyncpa [#allocation5], 1 }

// kernel: tpu_custom_call.1
= control target key start
LH: loop header
LB: loop body
LE: loop exit
PB: predicated region body
PF: predicated region fallthrough
CT: control target
= control target key end

     0   :  { %9 = vsyncpa [#allocation3], 0  ;;  %s1350_s0 = inlined_call_operand.hbm [shape: f32[8,32], index: 0, kind: input, shape index: {}]   ;;  %s1351_s1 = inlined_call_operand.hbm [shape: f32[8,32,32], index: 1, kind: input, shape index: {}]   ;;  %s1352_s2 = inlined_call_operand.hbm [shape: f32[8,32], index: 2, kind: input, shape index: {}]   ;;  %s1353_s3 = inlined_call_operand.vmem [shape: f32[1,32], index: 3, kind: input, shape index: {}]   ;;  %s1354_s4 = inlined_call_operand.vmem [shape: f32[8,14,32], index: 4, kind: output, shape index: {}]  }
   0x1   :  { %10 = vsyncpa [#allocation5], 0  ;;  %s1184_s15 = smov [#allocation4]  }
   0x2   :  { %s26_s16 = sshll.u32 %s1184_s15, 4  ;;  %s27_s16 = int_to_ptr.vmem [resolvable:$true] %s26_s16 }
   0x3   :  { %s1128_s17 = scalar_lea.vmem %s27_s16, 4096  ;;  %p1133_p1 = scmp.lt.s32.totalorder %s27_s16, %s27_s16 }
   0x4   :  { %p1129_p0 = scmp.ne.s32.totalorder %s27_s16, %s1128_s17  ;;  %p1134_p2 = scmp.lt.s32.totalorder %s1128_s17, %s1128_s17 }
   0x6   :  { %p1135_p3 = por %p1134_p2, %p1133_p1 }
   0x8   :  { %p1136_p4 = pnand %p1135_p3, %p1129_p0 }
   0xa   :  { %1139 = shalt.err (!%p1136_p4)
}
   0xb   :  { %s1185_s18 = smov 128   ;;  %s1186_s19 = smov 8  }
   0xc   :  { %32 = dma.hbm_to_vmem [thread:$0]  %s1351_s1, 4096, %s27_s16, [#allocation5], %s1185_s18, %s1185_s18, %s1186_s19  }
   0xd   :  { %s1187_s22 = smov [#allocation2]   ;;  %s1188_s24 = smov [#allocation6]  }
   0xe   :  { %s17_s23 = sshll.u32 %s1187_s22, 4  ;;  %s39_s25 = sshll.u32 %s1188_s24, 4  ;;  %s18_s23 = int_to_ptr.vmem [resolvable:$true] %s17_s23  ;;  %s40_s25 = int_to_ptr.vmem [resolvable:$true] %s39_s25 }
   0xf   :  { %s1148_s26 = scalar_lea.vmem %s18_s23, 128  ;;  %p1153_p6 = scmp.lt.s32.totalorder %s18_s23, %s18_s23 }
  0x10   :  { %p1149_p5 = scmp.ne.s32.totalorder %s18_s23, %s1148_s26  ;;  %p1154_p7 = scmp.lt.s32.totalorder %s1148_s26, %s1148_s26 }
  0x12   :  { %p1155_p8 = por %p1154_p7, %p1153_p6 }
  0x14   :  { %p1156_p9 = pnand %p1155_p8, %p1149_p5 }
  0x16   :  { %1159 = shalt.err (!%p1156_p9)
}
  0x17   :  { %20 = dma.hbm_to_vmem [thread:$0]  %s1350_s0, 128, %s18_s23, [#allocation3]  }
  0x18   :  { %s1168_s29 = scalar_lea.vmem %s40_s25, 128  ;;  %p1173_p11 = scmp.lt.s32.totalorder %s40_s25, %s40_s25 }
  0x19   :  { %p1169_p10 = scmp.ne.s32.totalorder %s40_s25, %s1168_s29  ;;  %p1174_p12 = scmp.lt.s32.totalorder %s1168_s29, %s1168_s29 }
  0x1b   :  { %p1175_p13 = por %p1174_p12, %p1173_p11 }
  0x1d   :  { %p1176_p0 = pnand %p1175_p13, %p1169_p10 }
  0x1f   :  { %1179 = shalt.err (!%p1176_p0)
}
  0x20   :  { %42 = dma.hbm_to_vmem [thread:$0]  %s1352_s2, 128, %s40_s25, [#allocation5]  }
  0x21   :  { %1180 = dma.done.wait [#allocation3], 128  }
  0x22   :  { %1181 = vsyncadd [#allocation3], 4294967168 }
  0x23   :  { %1182 = dma.done.wait [#allocation5], 4224  }
  0x24   :  { %1183 = vsyncadd [#allocation5], 4294963072  ;;  %v54_v0 = vld [vmem:[#allocation2] sm:$0xff]  ;;  %vm56_vm0 = vcmask 261120   ;;  %v1189_v4 = vmov 0.0   ;;  %v67_v5 = vld [vmem:[#allocation4 + $0x10] sm:$0xff] }
  0x25   :  { %v55_v1 = vmul.f32 %v54_v0, %v54_v0  ;;  %v68_v3 = vld [vmem:[#allocation4 + $0x18] sm:$0xff]  ;;  %1022 = vmatprep.subr.mxu0 %v1189_v4  ;;  %vm1190_vm1 = vmmov 0   ;;  %1033 = vmatprep.subr.mxu1 %v1189_v4  ;;  %v66_v6 = vld [vmem:[#allocation4 + $0x8] sm:$0xff]  ;;  %v65_v7 = vld [vmem:[#allocation4] sm:$0xff]  ;;  %vm950_vm10 = vcmask 259072  }
  0x26   :  { %1030 = vmatprep.mubr.msk.f32.mxu0 %vm1190_vm1, %v1189_v4  ;;  %1023 = vmatpush3.msra.mxu0 %v68_v3  ;;  %v154_v8 = vld [vmem:[#allocation4 + $0x38] sm:$0xff]  ;;  %v153_v14 = vld [vmem:[#allocation4 + $0x30] sm:$0xff]  ;;  %v152_v15 = vld [vmem:[#allocation4 + $0x28] sm:$0xff] }
  0x27   :  { %v57_v2 = vsel %vm56_vm0, %v55_v1, 0.0  ;;  %1024 = vmatprep.subr.mxu0 %v1189_v4  ;;  %1041 = vmatprep.mubr.msk.f32.mxu1 %vm1190_vm1, %v1189_v4  ;;  %v151_v16 = vld [vmem:[#allocation4 + $0x20] sm:$0xff]  ;;  %v240_v17 = vld [vmem:[#allocation4 + $0x58] sm:$0xff]  ;;  %v239_v24 = vld [vmem:[#allocation4 + $0x50] sm:$0xff] }
  0x28   :  { %58 = vadd.xlane.f32.xlu0 %v57_v2  ;;  %1025 = vmatpush3.msra.mxu0 %v67_v5  ;;  %v965_v18 = vld [vmem:[#allocation6] ss:$0 sm:$0xff]  ;;  %v238_v25 = vld [vmem:[#allocation4 + $0x48] sm:$0xff]  ;;  %v326_v27 = vld [vmem:[#allocation4 + $0x78] sm:$0xff] }
  0x29   :  { %1026 = vmatprep.subr.mxu0 %v1189_v4  ;;  %1034 = vmatpush3.msra.mxu1 %v154_v8  ;;  %v237_v26 = vld [vmem:[#allocation4 + $0x40] sm:$0xff]  ;;  %v325_v34 = vld [vmem:[#allocation4 + $0x70] sm:$0xff]  ;;  %v324_v35 = vld [vmem:[#allocation4 + $0x68] sm:$0xff] }
  0x2a   :  { %1027 = vmatpush3.msra.mxu0 %v66_v6  ;;  %1035 = vmatprep.subr.mxu1 %v1189_v4  ;;  %v967_v28 = vld [vmem:[#allocation6 + $0x1] ss:$0 sm:$0xff]  ;;  %v412_v37 = vld [vmem:[#allocation4 + $0x98] sm:$0xff]  ;;  %v969_v38 = vld [vmem:[#allocation6 + $0x2] ss:$0 sm:$0xff] }
  0x2b   :  { %1028 = vmatprep.subr.mxu0 %v1189_v4  ;;  %1036 = vmatpush3.msra.mxu1 %v153_v14  ;;  %v323_v36 = vld [vmem:[#allocation4 + $0x60] sm:$0xff]  ;;  %v411_v44 = vld [vmem:[#allocation4 + $0x90] sm:$0xff]  ;;  %v410_v45 = vld [vmem:[#allocation4 + $0x88] sm:$0xff] }
  0x2c   :  { %1029 = vmatpush3.msra.mxu0 %v65_v7  ;;  %1037 = vmatprep.subr.mxu1 %v1189_v4  ;;  %v409_v46 = vld [vmem:[#allocation4 + $0x80] sm:$0xff]  ;;  %v498_v47 = vld [vmem:[#allocation4 + $0xb8] sm:$0xff]  ;;  %v497_v54 = vld [vmem:[#allocation4 + $0xb0] sm:$0xff] }
  0x2d   :  { %1044 = vmatprep.subr.mxu0 %v1189_v4  ;;  %1038 = vmatpush3.msra.mxu1 %v152_v15  ;;  %v971_v48 = vld [vmem:[#allocation6 + $0x3] ss:$0 sm:$0xff]  ;;  %v496_v55 = vld [vmem:[#allocation4 + $0xa8] sm:$0xff]  ;;  %v584_v57 = vld [vmem:[#allocation4 + $0xd8] sm:$0xff] }
  0x2e   :  { %1039 = vmatprep.subr.mxu1 %v1189_v4  ;;  %v495_v56 = vld [vmem:[#allocation4 + $0xa0] sm:$0xff]  ;;  %v582_v1 = vld [vmem:[#allocation4 + $0xc8] sm:$0xff]  ;;  %v670_v3 = vld [vmem:[#allocation4 + $0xf8] sm:$0xff] }
  0x2f   :  { %1040 = vmatpush3.msra.mxu1 %v151_v16  ;;  %v973_v58 = vld [vmem:[#allocation6 + $0x4] ss:$0 sm:$0xff]  ;;  %v975_v5 = vld [vmem:[#allocation6 + $0x5] ss:$0 sm:$0xff]  ;;  %v977_v14 = vld [vmem:[#allocation6 + $0x6] ss:$0 sm:$0xff] }
  0x30   :  { %1055 = vmatprep.subr.mxu1 %v1189_v4  ;;  %v581_v2 = vld [vmem:[#allocation4 + $0xc0] sm:$0xff] }
  0xb1   :  { %v59_v9 = vpop.xlane.xlu0 %58 }
  0xb2   :  { %v61_v10 = vmul.f32 0.03125, %v59_v9 }
  0xb4   :  { %v62_v11 = vadd.f32 1e-08, %v61_v10 }
  0xb6   :  { %1118 = vrsqrt.f32 %v62_v11  ;;  %v669_v11 = vld [vmem:[#allocation4 + $0xf0] sm:$0xff] }
  0xc3   :  { %v1119_v12 = vpop.eup %1118 }
  0xc4   :  { %v64_v13 = vmul.f32 %v1119_v12, %v54_v0  ;;  %v583_v0 = vld [vmem:[#allocation4 + $0xd0] sm:$0xff]  ;;  %v668_v12 = vld [vmem:[#allocation4 + $0xe8] sm:$0xff] }
  0xc6   :  { %1031 = vmatmul.mubr.msk.f32.vlgmr.msra.gmra.mxu0 %vm56_vm0, %v64_v13  ;;  %v667_v13 = vld [vmem:[#allocation4 + $0xe0] sm:$0xff] }
  0xc7   :  { %1052 = vmatprep.mubr.msk.f32.mxu0 %vm1190_vm1, %v1189_v4  ;;  %1045 = vmatpush3.msra.mxu0 %v240_v17 }
  0xc8   :  { %1046 = vmatprep.subr.mxu0 %v1189_v4 }
  0xc9   :  { %1047 = vmatpush3.msra.mxu0 %v239_v24 }
  0xca   :  { %1048 = vmatprep.subr.mxu0 %v1189_v4 }
  0xcb   :  { %1049 = vmatpush3.msra.mxu0 %v238_v25 }
  0xcc   :  { %1050 = vmatprep.subr.mxu0 %v1189_v4 }
  0xcd   :  { %1051 = vmatpush3.msra.mxu0 %v237_v26 }
  0xce   :  { %1066 = vmatprep.subr.mxu0 %v1189_v4 }
 0x186   :  { %v143_v19 = vpop.f32.mrf.mxu0 }
 0x187   :  { %v144_v20 = vadd.f32 %v965_v18, %v143_v19 }
 0x188   :  { %v1032_v21 = vpop.f32.mrf.mxu0 }
 0x189   :  { %vm147_vm2 = vcmp.ge.f32.partialorder %v144_v20, 0.0  ;;  %v148_v22 = vmul.f32 0.2, %v144_v20 }
 0x18b   :  { %v149_v23 = vsel %vm147_vm2, %v144_v20, %v148_v22  ;;  %v1191_v20 = vmov 1966171168   ;;  %v767_v22 = vlaneseq }
 0x18c   :  { %1042 = vmatmul.mubr.msk.f32.vlgmr.msra.gmra.mxu1 %vm56_vm0, %v149_v23  ;;  %v765_v21 = vunpack.c.l.s4 %v1191_v20  ;;  %v979_v23 = vld [vmem:[#allocation6 + $0x7] ss:$0 sm:$0xff] }
 0x18d   :  { %1063 = vmatprep.mubr.msk.f32.mxu1 %vm1190_vm1, %v1189_v4  ;;  %1056 = vmatpush3.msra.mxu1 %v326_v27  ;;  %v768_v26 = vshrl.u32 %v767_v22, 7 }
 0x18e   :  { %1057 = vmatprep.subr.mxu1 %v1189_v4  ;;  %v766_v25 = vunpack.c.0.s8 %v765_v21 }
 0x18f   :  { %1058 = vmatpush3.msra.mxu1 %v325_v34 }
 0x190   :  { %1059 = vmatprep.subr.mxu1 %v1189_v4 }
 0x191   :  { %1060 = vmatpush3.msra.mxu1 %v324_v35 }
 0x192   :  { %1061 = vmatprep.subr.mxu1 %v1189_v4 }
 0x193   :  { %1062 = vmatpush3.msra.mxu1 %v323_v36 }
 0x194   :  { %1077 = vmatprep.subr.mxu1 %v1189_v4 }
 0x24c   :  { %v229_v29 = vpop.f32.mrf.mxu1 }
 0x24d   :  { %v230_v30 = vadd.f32 %v967_v28, %v229_v29  ;;  %v769_v29 = vsub.s32 %v766_v25, %v768_v26 }
 0x24e   :  { %v1043_v31 = vpop.f32.mrf.mxu1 }
 0x24f   :  { %vm233_vm3 = vcmp.ge.f32.partialorder %v230_v30, 0.0  ;;  %v234_v32 = vmul.f32 0.2, %v230_v30  ;;  %v981_v31 = vld [vmem:[%s1353_s3] ss:$0 sm:$0xff] }
 0x251   :  { %v235_v33 = vsel %vm233_vm3, %v230_v30, %v234_v32 }
 0x252   :  { %1053 = vmatmul.mubr.msk.f32.vlgmr.msra.gmra.mxu0 %vm56_vm0, %v235_v33 }
 0x253   :  { %1074 = vmatprep.mubr.msk.f32.mxu0 %vm1190_vm1, %v1189_v4  ;;  %1067 = vmatpush3.msra.mxu0 %v412_v37  ;;  %v814_v37 = vsub.s32 0, %v768_v26 }
 0x254   :  { %1068 = vmatprep.subr.mxu0 %v1189_v4 }
 0x255   :  { %1069 = vmatpush3.msra.mxu0 %v411_v44 }
 0x256   :  { %1070 = vmatprep.subr.mxu0 %v1189_v4 }
 0x257   :  { %1071 = vmatpush3.msra.mxu0 %v410_v45 }
 0x258   :  { %1072 = vmatprep.subr.mxu0 %v1189_v4 }
 0x259   :  { %1073 = vmatpush3.msra.mxu0 %v409_v46 }
 0x25a   :  { %1088 = vmatprep.subr.mxu0 %v1189_v4 }
 0x312   :  { %v315_v39 = vpop.f32.mrf.mxu0 }
 0x313   :  { %v316_v40 = vadd.f32 %v969_v38, %v315_v39 }
 0x314   :  { %v1054_v41 = vpop.f32.mrf.mxu0 }
 0x315   :  { %vm319_vm4 = vcmp.ge.f32.partialorder %v316_v40, 0.0  ;;  %v320_v42 = vmul.f32 0.2, %v316_v40 }
 0x317   :  { %v321_v43 = vsel %vm319_vm4, %v316_v40, %v320_v42 }
 0x318   :  { %1064 = vmatmul.mubr.msk.f32.vlgmr.msra.gmra.mxu1 %vm56_vm0, %v321_v43 }
 0x319   :  { %1085 = vmatprep.mubr.msk.f32.mxu1 %vm1190_vm1, %v1189_v4  ;;  %1078 = vmatpush3.msra.mxu1 %v498_v47 }
 0x31a   :  { %1079 = vmatprep.subr.mxu1 %v1189_v4 }
 0x31b   :  { %1080 = vmatpush3.msra.mxu1 %v497_v54 }
 0x31c   :  { %1081 = vmatprep.subr.mxu1 %v1189_v4 }
 0x31d   :  { %1082 = vmatpush3.msra.mxu1 %v496_v55 }
 0x31e   :  { %1083 = vmatprep.subr.mxu1 %v1189_v4 }
 0x31f   :  { %1084 = vmatpush3.msra.mxu1 %v495_v56 }
 0x320   :  { %1099 = vmatprep.subr.mxu1 %v1189_v4 }
 0x3d8   :  { %v401_v49 = vpop.f32.mrf.mxu1 }
 0x3d9   :  { %v402_v50 = vadd.f32 %v971_v48, %v401_v49 }
 0x3da   :  { %v1065_v51 = vpop.f32.mrf.mxu1 }
 0x3db   :  { %vm405_vm5 = vcmp.ge.f32.partialorder %v402_v50, 0.0  ;;  %v406_v52 = vmul.f32 0.2, %v402_v50 }
 0x3dd   :  { %v407_v53 = vsel %vm405_vm5, %v402_v50, %v406_v52 }
 0x3de   :  { %1075 = vmatmul.mubr.msk.f32.vlgmr.msra.gmra.mxu0 %vm56_vm0, %v407_v53 }
 0x3df   :  { %1096 = vmatprep.mubr.msk.f32.mxu0 %vm1190_vm1, %v1189_v4  ;;  %1089 = vmatpush3.msra.mxu0 %v584_v57 }
 0x3e0   :  { %1090 = vmatprep.subr.mxu0 %v1189_v4 }
 0x3e1   :  { %1091 = vmatpush3.msra.mxu0 %v583_v0 }
 0x3e2   :  { %1092 = vmatprep.subr.mxu0 %v1189_v4 }
 0x3e3   :  { %1093 = vmatpush3.msra.mxu0 %v582_v1 }
 0x3e4   :  { %1094 = vmatprep.subr.mxu0 %v1189_v4 }
 0x3e5   :  { %1095 = vmatpush3.msra.mxu0 %v581_v2 }
 0x49e   :  { %v487_v59 = vpop.f32.mrf.mxu0 }
 0x49f   :  { %v488_v60 = vadd.f32 %v973_v58, %v487_v59 }
 0x4a0   :  { %v1076_v61 = vpop.f32.mrf.mxu0 }
 0x4a1   :  { %vm491_vm6 = vcmp.ge.f32.partialorder %v488_v60, 0.0  ;;  %v492_v62 = vmul.f32 0.2, %v488_v60 }
 0x4a3   :  { %v493_v63 = vsel %vm491_vm6, %v488_v60, %v492_v62 }
 0x4a4   :  { %1086 = vmatmul.mubr.msk.f32.vlgmr.msra.gmra.mxu1 %vm56_vm0, %v493_v63 }
 0x4a5   :  { %1107 = vmatprep.mubr.msk.f32.mxu1 %vm1190_vm1, %v1189_v4  ;;  %1100 = vmatpush3.msra.mxu1 %v670_v3 }
 0x4a6   :  { %1101 = vmatprep.subr.mxu1 %v1189_v4 }
 0x4a7   :  { %1102 = vmatpush3.msra.mxu1 %v669_v11 }
 0x4a8   :  { %1103 = vmatprep.subr.mxu1 %v1189_v4 }
 0x4a9   :  { %1104 = vmatpush3.msra.mxu1 %v668_v12 }
 0x4aa   :  { %1105 = vmatprep.subr.mxu1 %v1189_v4 }
 0x4ab   :  { %1106 = vmatpush3.msra.mxu1 %v667_v13 }
 0x564   :  { %v573_v6 = vpop.f32.mrf.mxu1 }
 0x565   :  { %v574_v7 = vadd.f32 %v975_v5, %v573_v6 }
 0x566   :  { %v1087_v8 = vpop.f32.mrf.mxu1 }
 0x567   :  { %vm577_vm7 = vcmp.ge.f32.partialorder %v574_v7, 0.0  ;;  %v578_v9 = vmul.f32 0.2, %v574_v7 }
 0x569   :  { %v579_v10 = vsel %vm577_vm7, %v574_v7, %v578_v9 }
 0x56a   :  { %1097 = vmatmul.mubr.msk.f32.vlgmr.msra.gmra.mxu0 %vm56_vm0, %v579_v10 }
 0x62a   :  { %v659_v15 = vpop.f32.mrf.mxu0 }
 0x62b   :  { %v660_v16 = vadd.f32 %v977_v14, %v659_v15 }
 0x62c   :  { %v1098_v17 = vpop.f32.mrf.mxu0 }
 0x62d   :  { %vm663_vm8 = vcmp.ge.f32.partialorder %v660_v16, 0.0  ;;  %v664_v18 = vmul.f32 0.2, %v660_v16 }
 0x62f   :  { %v665_v19 = vsel %vm663_vm8, %v660_v16, %v664_v18 }
 0x630   :  { %1108 = vmatmul.mubr.msk.f32.vlgmr.msra.gmra.mxu1 %vm56_vm0, %v665_v19 }
 0x6f0   :  { %v745_v24 = vpop.f32.mrf.mxu1 }
 0x6f1   :  { %v746_v27 = vadd.f32 %v979_v23, %v745_v24 }
 0x6f2   :  { %v1109_v4 = vpop.f32.mrf.mxu1 }
 0x6f3   :  { %vm749_vm9 = vcmp.ge.f32.partialorder %v746_v27, 0.0  ;;  %v750_v28 = vmul.f32 0.2, %v746_v27 }
 0x6f5   :  { %v751_v30 = vsel %vm749_vm9, %v746_v27, %v750_v28 }
 0x6f6   :  { %v752_v32 = vmul.f32 1.4142135, %v751_v30  ;;  %v754_v33 = vmul.f32 0.70710677, %v751_v30 }
 0x6f8   :  { %v761_v34 = vadd.f32 %v981_v31, %v754_v33  ;;  %v861_v35 = vcombine.high %v752_v32, %v752_v32  ;;  %v868_v36 = vrot.slane %v752_v32, %v769_v29 }
 0x6fa   :  { %v763_v38 = vcombine.high %v761_v34, %v761_v34  ;;  %v770_v39 = vrot.slane %v761_v34, %v769_v29  ;;  %v875_v40 = vrot.slane %v861_v35, %v769_v29  ;;  %v876_v41 = vcombine.high %v868_v36, %v868_v36 }
 0x6fb   :  { %v884_v42 = vrot.slane %v868_v36, %v769_v29 }
 0x6fc   :  { %v777_v43 = vrot.slane %v763_v38, %v769_v29  ;;  %v778_v44 = vcombine.high %v770_v39, %v770_v39  ;;  %v786_v45 = vrot.slane %v770_v39, %v769_v29  ;;  %v877_v46 = vcombine.high %v875_v40, %v875_v40 }
 0x6fd   :  { %v891_v47 = vrot.slane %v875_v40, %v769_v29  ;;  %v898_v48 = vrot.slane %v876_v41, %v769_v29  ;;  %v906_v49 = vcombine.high %v884_v42, %v884_v42  ;;  %v913_v50 = vrot.slane %v884_v42, %v814_v37 }
 0x6fe   :  { %v779_v51 = vcombine.high %v777_v43, %v777_v43  ;;  %v793_v52 = vrot.slane %v777_v43, %v769_v29  ;;  %v800_v53 = vrot.slane %v778_v44, %v769_v29  ;;  %v808_v54 = vcombine.high %v786_v45, %v786_v45 }
 0x6ff   :  { %v815_v55 = vrot.slane %v786_v45, %v814_v37  ;;  %v905_v56 = vrot.slane %v877_v46, %v769_v29  ;;  %v907_v57 = vcombine.high %v891_v47, %v891_v47  ;;  %v908_v58 = vcombine.high %v898_v48, %v898_v48  ;;  %951 = vst.msk [vmem:[%s1354_s4 + $0x8] sm:$0x3f] %vm950_vm10, %v913_v50 }
 0x700   :  { %v807_v59 = vrot.slane %v779_v51, %v769_v29  ;;  %v809_v60 = vcombine.high %v793_v52, %v793_v52  ;;  %v810_v61 = vcombine.high %v800_v53, %v800_v53  ;;  %v819_v62 = vrot.slane %v800_v53, %v814_v37 }
 0x701   :  { %v823_v63 = vrot.slane %v808_v54, %v814_v37  ;;  %v831_v0 = vrot.slane %v793_v52, %v814_v37  ;;  %852 = vst.msk [vmem:[%s1354_s4] sm:$0xff] %vm56_vm0, %v815_v55  ;;  %v909_v1 = vcombine.high %v905_v56, %v905_v56  ;;  %v917_v2 = vrot.slane %v898_v48, %v814_v37 }
 0x702   :  { %v811_v3 = vcombine.high %v807_v59, %v807_v59  ;;  %v827_v5 = vrot.slane %v810_v61, %v814_v37  ;;  %v835_v6 = vrot.slane %v807_v59, %v814_v37  ;;  %v839_v7 = vrot.slane %v809_v60, %v814_v37  ;;  %853 = vst.msk [vmem:[%s1354_s4 + $0x10] sm:$0xff] %vm56_vm0, %v819_v62 }
 0x703   :  { %854 = vst.msk [vmem:[%s1354_s4 + $0x20] sm:$0xff] %vm56_vm0, %v823_v63  ;;  %856 = vst.msk [vmem:[%s1354_s4 + $0x40] sm:$0xff] %vm56_vm0, %v831_v0  ;;  %v921_v8 = vrot.slane %v906_v49, %v814_v37  ;;  %v925_v9 = vrot.slane %v908_v58, %v814_v37  ;;  %v929_v10 = vrot.slane %v891_v47, %v814_v37 }
 0x704   :  { %v933_v11 = vrot.slane %v905_v56, %v814_v37  ;;  %952 = vst.msk [vmem:[%s1354_s4 + $0x18] sm:$0x3f] %vm950_vm10, %v917_v2  ;;  %v843_v12 = vrot.slane %v811_v3, %v814_v37  ;;  %v937_v13 = vrot.slane %v907_v57, %v814_v37  ;;  %v941_v14 = vrot.slane %v909_v1, %v814_v37 }
 0x705   :  { %855 = vst.msk [vmem:[%s1354_s4 + $0x30] sm:$0xff] %vm56_vm0, %v827_v5  ;;  %857 = vst.msk [vmem:[%s1354_s4 + $0x50] sm:$0xff] %vm56_vm0, %v835_v6 }
 0x706   :  { %858 = vst.msk [vmem:[%s1354_s4 + $0x60] sm:$0xff] %vm56_vm0, %v839_v7  ;;  %859 = vst.msk [vmem:[%s1354_s4 + $0x70] sm:$0xff] %vm56_vm0, %v843_v12 }
 0x707   :  { %953 = vst.msk [vmem:[%s1354_s4 + $0x28] sm:$0x3f] %vm950_vm10, %v921_v8  ;;  %954 = vst.msk [vmem:[%s1354_s4 + $0x38] sm:$0x3f] %vm950_vm10, %v925_v9 }
 0x708   :  { %955 = vst.msk [vmem:[%s1354_s4 + $0x48] sm:$0x3f] %vm950_vm10, %v929_v10  ;;  %956 = vst.msk [vmem:[%s1354_s4 + $0x58] sm:$0x3f] %vm950_vm10, %v933_v11 }
 0x709   :  { %957 = vst.msk [vmem:[%s1354_s4 + $0x68] sm:$0x3f] %vm950_vm10, %v937_v13  ;;  %958 = vst.msk [vmem:[%s1354_s4 + $0x78] sm:$0x3f] %vm950_vm10, %v941_v14 }
 0x70a   :  { %963 = vsyncpa [#allocation3], 1 }
 0x70b   :  { %964 = vsyncpa [#allocation5], 1 }

</bundles_post_ra>
